<compile_context>
chip_gen: v7x
topology: tpu7x:2x2x1
jax: 0.10.0
libtpu: 0.0.40
codegen_flags: <defaults>
</compile_context>

<pallas_src>
import functools

import jax
import jax.numpy as jnp
from jax import lax
from jax.experimental import pallas as pl
from jax.experimental.pallas import tpu as pltpu

EPS = 1e-5


# ----------------------------- Pallas kernel ------------------------------- #
def _drb_kernel(x_ref, w1_ref, wd_ref, w2_ref, shift_ref, mask_ref, out_ref,
                *, W, Mb):
    """DilatedResidualBlock forward on one batch block, channel-major layout.

    Shapes (cp = Cout padded to 8, ci = Cin padded to 8, Mb = nb*H*W):
      x_ref     (ci, Mb)        input pixels, flat (n, y, x) order on lanes
      w1_ref    (cp, ci)        conv_1x1_1 weight (bn1 scale folded in)
      wd_ref    (27, cp, cp)    dilated conv weights, row = k*9 + ky*3 + kx
      w2_ref    (3, cp, cp)     conv_1x1_2 weight, one block per branch
      shift_ref (cp, 5)         BN shifts [b1, bd1, bd2, bd3, b2]
      mask_ref  (27, Mb)        0/1 border-validity mask per tap
      out_ref   (cp, Mb)        DRB output (pre-pooling)
    """
    f32 = jnp.float32
    x = x_ref[...].astype(f32)

    def shift_col(j):                                    # (cp, 1) lane-broadcast
        return shift_ref[:, j:j + 1]

    # conv_1x1_1 + bn1 (scale already folded into w1)
    x0 = jnp.dot(w1_ref[...], x, preferred_element_type=f32) + shift_col(0)

    # residual + bn2 shift accumulated up front; conv_1x1_2 is added per branch.
    y = x0 + shift_col(4)

    def dilated_conv(v, k, d):
        # 3x3 conv, dilation d, as 9 accumulating matmuls over shifted taps.
        acc = jnp.dot(wd_ref[k * 9 + 4], v, preferred_element_type=f32)  # center
        for ky in range(3):
            for kx in range(3):
                if ky == 1 and kx == 1:
                    continue
                t = k * 9 + ky * 3 + kx
                s = (ky - 1) * d * W + (kx - 1) * d      # flat lane offset of tap
                rolled = pltpu.roll(v, (-s) % Mb, 1)     # rolled[:, m] = v[:, m+s]
                tap = rolled * mask_ref[t:t + 1, :]      # zero outside the image
                acc = acc + jnp.dot(wd_ref[t], tap, preferred_element_type=f32)
        return acc + shift_col(1 + k)                    # + bn_d{k+1} shift

    xk = x0
    for k, d in enumerate((1, 2, 3)):
        xk = dilated_conv(xk, k, d)                      # x1, x2, x3 in turn
        y = y + jnp.dot(w2_ref[k], xk, preferred_element_type=f32)

    out_ref[...] = y.astype(out_ref.dtype)


# ------------------------------ glue / wrapper ------------------------------ #
def _round_up(x, m):
    return ((x + m - 1) // m) * m


def _tpu_vmem_capacity():
    try:
        return int(pltpu.get_tpu_info().vmem_capacity_bytes)
    except Exception:
        return 64 << 20                      # v7x per-TensorCore VMEM (smallest)


def _pick_block_n(N, H, W, cin_p, cout_p):
    """Images per grid step: keep >= min(N, 4) grid steps (DMA pipelining and
    both v7x TensorCores), keep lane blocks 128-aligned, stay well inside VMEM."""
    budget = _tpu_vmem_capacity() // 4
    # rough per-image f32 VMEM: double-buffered in/out blocks, tap masks and
    # ~6 live (cout_p, H*W) activation planes inside the kernel body.
    per_img = 4 * H * W * (2 * cin_p + 2 * cout_p + 6 * cout_p + 2 * 27)
    nb_mem = max(1, budget // max(per_img, 1))
    target_steps = min(N, 4)

    def lane_ok(nb):
        return (nb * H * W) % 128 == 0 or nb == N

    best = None
    for nb in range(1, N + 1):
        if N % nb or nb > nb_mem or not lane_ok(nb):
            continue
        if N // nb >= target_steps:
            best = nb                        # largest nb still giving enough steps
    if best is None:                         # fall back: smallest legal block
        best = next(nb for nb in range(1, N + 1) if N % nb == 0 and lane_ok(nb))
    return best


def _prepare_kernel_params(params, cin_p, cout_p):
    """Fold BN scales into the conv weights, reorient to (out, in) blocks."""
    w1, wd, w2, bn = params["w1"], params["wd"], params["w2"], params["bn"]
    cin, cout = w1.shape
    scales, shifts = bn[0::2], bn[1::2]                  # (5, cout) each
    po, pi = cout_p - cout, cin_p - cin

    # conv_1x1_1 (+ bn1 scale):  (cout_p, cin_p), y = W @ x
    w1f = jnp.pad((w1 * scales[0][None, :]).T, ((0, po), (0, pi)))

    # dilated convs (+ bn_d{k} scale): (3,3,3,i,o) HWIO -> (27, o, i)
    wd_s = wd * scales[1:4][:, None, None, None, :]
    wd_oi = jnp.transpose(wd_s, (0, 1, 2, 4, 3))
    wd_oi = jnp.pad(wd_oi, ((0, 0), (0, 0), (0, 0), (0, po), (0, po)))
    wdf = wd_oi.reshape(27, cout_p, cout_p)              # row = k*9 + ky*3 + kx

    # conv_1x1_2 (+ bn2 scale): one (o, i) block per branch of concat([x1,x2,x3])
    w2_s = (w2 * scales[4][None, :]).reshape(3, cout, cout)      # (branch, i, o)
    w2f = jnp.pad(jnp.transpose(w2_s, (0, 2, 1)), ((0, 0), (0, po), (0, po)))

    # BN shifts as lane-broadcastable columns: (cout_p, 5) = [b1, bd1, bd2, bd3, b2]
    shiftf = jnp.pad(shifts, ((0, 0), (0, po))).T
    return w1f, wdf, w2f, shiftf


def _make_tap_masks(H, W, nb):
    """0/1 validity mask per (dilation, ky, kx) tap, tiled over the nb images."""
    y = jnp.arange(H, dtype=jnp.int32)[:, None]
    x = jnp.arange(W, dtype=jnp.int32)[None, :]
    rows = []
    for d in (1, 2, 3):
        for ky in range(3):
            for kx in range(3):
                oy, ox = (ky - 1) * d, (kx - 1) * d
                ok = ((y + oy >= 0) & (y + oy < H) &
                      (x + ox >= 0) & (x + ox < W))
                rows.append(ok.reshape(-1))
    m = jnp.stack(rows, axis=0).astype(jnp.float32)      # (27, H*W)
    return jnp.tile(m, (1, nb))                          # (27, nb*H*W)


def downsample_drb_pallas(x_nchw, params, use_pool=True, block_n=None):
    """Forward pass of DownsampleDilatedResidualBlock.  x is NCHW, output NCHW."""
    N, cin, H, W = x_nchw.shape
    cout = params["w1"].shape[1]
    cin_p = _round_up(cin, 8)
    cout_p = _round_up(cout, 8)
    if use_pool:
        assert H % 2 == 0 and W % 2 == 0, "pooling path needs even H, W"

    nb = block_n if block_n is not None else _pick_block_n(N, H, W, cin_p, cout_p)
    assert N % nb == 0
    Mb = nb * H * W
    assert Mb % 128 == 0 or nb == N, "lane block must be a multiple of 128"

    w1f, wdf, w2f, shiftf = _prepare_kernel_params(params, cin_p, cout_p)
    masks = _make_tap_masks(H, W, nb)

    # channel-major, flat (n, y, x) on lanes; pad input channels to 8 sublanes
    x2d = jnp.transpose(x_nchw, (1, 0, 2, 3)).reshape(cin, N * H * W)
    if cin_p != cin:
        x2d = jnp.pad(x2d, ((0, cin_p - cin), (0, 0)))

    kernel = functools.partial(_drb_kernel, W=W, Mb=Mb)
    vmem_limit = int(min(_tpu_vmem_capacity() // 2, 48 << 20))

    y2d = pl.pallas_call(
        kernel,
        out_shape=jax.ShapeDtypeStruct((cout_p, N * H * W), jnp.float32),
        grid_spec=pltpu.PrefetchScalarGridSpec(
            num_scalar_prefetch=0,
            grid=(N // nb,),
            in_specs=[
                pl.BlockSpec((cin_p, Mb), lambda n: (0, n)),           # pixels
                pl.BlockSpec((cout_p, cin_p), lambda n: (0, 0)),       # w1
                pl.BlockSpec((27, cout_p, cout_p), lambda n: (0, 0, 0)),  # wd
                pl.BlockSpec((3, cout_p, cout_p), lambda n: (0, 0, 0)),   # w2
                pl.BlockSpec((cout_p, 5), lambda n: (0, 0)),           # shifts
                pl.BlockSpec((27, Mb), lambda n: (0, 0)),              # tap masks
            ],
            out_specs=pl.BlockSpec((cout_p, Mb), lambda n: (0, n)),
        ),
        compiler_params=pltpu.CompilerParams(
            dimension_semantics=("parallel",),
            vmem_limit_bytes=vmem_limit),
    )(x2d, w1f, wdf, w2f, shiftf, masks)

    y = y2d[:cout].reshape(cout, N, H, W).transpose(1, 0, 2, 3)        # NCHW
    if use_pool:
        # TODO(synk): the 2x2 stride-2 decimation stays in XLA -- stride-2
        # selection along the lane axis has no cheap Mosaic primitive in this
        # channel-major layout; the arrays involved are tiny (C * H * W f32).
        y = y.reshape(N, cout, H // 2, 2, W // 2, 2).mean(axis=(3, 5))
    return y


# ------------------------- deterministic parameters ------------------------- #
def init_params(key, cin, cout):
    keys = jax.random.split(key, 9)
    w1 = 0.2 * jax.random.normal(keys[0], (cin, cout), jnp.float32)
    wd = 0.1 * jax.random.normal(keys[1], (3, 3, 3, cout, cout), jnp.float32)
    w2 = 0.1 * jax.random.normal(keys[2], (3 * cout, cout), jnp.float32)

    def bn_scale_shift(k):
        kg, kb, km, kv = jax.random.split(k, 4)
        gamma = 1.0 + 0.1 * jax.random.normal(kg, (cout,), jnp.float32)
        beta = 0.1 * jax.random.normal(kb, (cout,), jnp.float32)
        mean = 0.1 * jax.random.normal(km, (cout,), jnp.float32)
        var = 1.0 + 0.5 * jax.random.uniform(kv, (cout,), jnp.float32)
        scale = gamma * lax.rsqrt(var + EPS)
        shift = beta - mean * scale
        return scale, shift

    rows = []
    for i in range(5):
        s, b = bn_scale_shift(keys[4 + i])
        rows += [s, b]
    bn = jnp.stack(rows, axis=0)  # (10, cout): [s1,b1,sd1,bd1,sd2,bd2,sd3,bd3,s2,b2]
    return {"w1": w1, "wd": wd, "w2": w2, "bn": bn}


# ------------------------------ pure-JAX reference --------------------------- #
def ref_forward(x_nhwc, params, use_pool=True):
    w1, wd, w2, bn = params["w1"], params["wd"], params["w2"], params["bn"]

    def bn_apply(v, idx):
        return v * bn[2 * idx][None, None, None, :] + bn[2 * idx + 1][None, None, None, :]

    def conv3(v, w_hwio, d):
        return lax.conv_general_dilated(
            v, w_hwio, window_strides=(1, 1), padding=((d, d), (d, d)),
            rhs_dilation=(d, d), dimension_numbers=("NHWC", "HWIO", "NHWC"))

    x0 = bn_apply(jnp.einsum("nhwi,io->nhwo", x_nhwc, w1), 0)
    x1 = bn_apply(conv3(x0, wd[0], 1), 1)
    x2 = bn_apply(conv3(x1, wd[1], 2), 2)
    x3 = bn_apply(conv3(x2, wd[2], 3), 3)
    cat = jnp.concatenate([x1, x2, x3], axis=-1)
    y = bn_apply(jnp.einsum("nhwi,io->nhwo", cat, w2), 4) + x0
    if use_pool:
        N, H, W, C = y.shape
        y = y.reshape(N, H // 2, 2, W // 2, 2, C).mean(axis=(2, 4))
    return y


if __name__ == "__main__":
    N, Cin, Cout, H, W = 2, 4, 8, 16, 16
    key = jax.random.PRNGKey(0)
    kx, kp = jax.random.split(key)

    x_nchw = jax.random.normal(kx, (N, Cin, H, W), jnp.float32)   # PyTorch layout
    params = init_params(kp, Cin, Cout)

    out_nchw = downsample_drb_pallas(x_nchw, params, use_pool=True)
    out_nchw = jax.block_until_ready(out_nchw)
    assert out_nchw.shape == (N, Cout, H // 2, W // 2)

    x_nhwc = jnp.transpose(x_nchw, (0, 2, 3, 1))
    ref_nchw = jnp.transpose(ref_forward(x_nhwc, params, use_pool=True),
                             (0, 3, 1, 2))
    err = float(jnp.max(jnp.abs(out_nchw - ref_nchw)))
    if err > 1e-3:
        raise AssertionError(f"mismatch vs reference, max abs err = {err}")
    print("KERNEL_OK")
</pallas_src>

<mosaic_0001>
module attributes {stable_mosaic.version = 11 : i64} {
  func.func @_drb_kernel(%arg0: i32, %arg1: memref<8x256xf32, #tpu.memory_space<vmem>>, %arg2: memref<8x8xf32, #tpu.memory_space<vmem>>, %arg3: memref<27x8x8xf32, #tpu.memory_space<vmem>>, %arg4: memref<3x8x8xf32, #tpu.memory_space<vmem>>, %arg5: memref<8x5xf32, #tpu.memory_space<vmem>>, %arg6: memref<27x256xf32, #tpu.memory_space<vmem>>, %arg7: memref<8x256xf32, #tpu.memory_space<vmem>>) attributes {dimension_semantics = [#tpu.dimension_semantics<parallel>], iteration_bounds = array<i64: 2>, scalar_prefetch = 0 : i64, scratch_operands = 0 : i64, tpu.core_type = #tpu.core_type<tc>, window_params = [{transform_indices = @transform_0, window_bounds = array<i64: 8, 256>}, {pipeline_mode = #tpu.pipeline_mode<synchronous>, transform_indices = @transform_1, window_bounds = array<i64: 8, 8>}, {pipeline_mode = #tpu.pipeline_mode<synchronous>, transform_indices = @transform_2, window_bounds = array<i64: 27, 8, 8>}, {pipeline_mode = #tpu.pipeline_mode<synchronous>, transform_indices = @transform_3, window_bounds = array<i64: 3, 8, 8>}, {pipeline_mode = #tpu.pipeline_mode<synchronous>, transform_indices = @transform_4, window_bounds = array<i64: 8, 5>}, {pipeline_mode = #tpu.pipeline_mode<synchronous>, transform_indices = @transform_5, window_bounds = array<i64: 27, 256>}, {transform_indices = @transform_6, window_bounds = array<i64: 8, 256>}]} {
    %c0 = arith.constant 0 : index
    %c0_0 = arith.constant 0 : index
    %0 = vector.load %arg1[%c0, %c0_0] : memref<8x256xf32, #tpu.memory_space<vmem>>, vector<8x256xf32>
    %c0_1 = arith.constant 0 : index
    %c0_2 = arith.constant 0 : index
    %1 = vector.load %arg2[%c0_1, %c0_2] : memref<8x8xf32, #tpu.memory_space<vmem>>, vector<8x8xf32>
    %cst = arith.constant dense<0.000000e+00> : vector<8x256xf32>
    %2 = tpu.matmul %1, %0, %cst {dimension_numbers = #tpu.dot_dimension_numbers<[1], [0], [0], [1], [0, 0, 1, 1], [], []>} : vector<8x8xf32>, vector<8x256xf32>, vector<8x256xf32> -> vector<8x256xf32>
    %c0_3 = arith.constant 0 : index
    %c0_4 = arith.constant 0 : index
    %3 = vector.load %arg5[%c0_3, %c0_4] : memref<8x5xf32, #tpu.memory_space<vmem>>, vector<8x1xf32>
    %4 = vector.broadcast %3 : vector<8x1xf32> to vector<8x256xf32>
    %5 = arith.addf %2, %4 : vector<8x256xf32>
    %c0_5 = arith.constant 0 : index
    %c4 = arith.constant 4 : index
    %6 = vector.load %arg5[%c0_5, %c4] : memref<8x5xf32, #tpu.memory_space<vmem>>, vector<8x1xf32>
    %7 = vector.broadcast %6 : vector<8x1xf32> to vector<8x256xf32>
    %8 = arith.addf %5, %7 : vector<8x256xf32>
    %c4_6 = arith.constant 4 : index
    %c0_7 = arith.constant 0 : index
    %c0_8 = arith.constant 0 : index
    %9 = vector.load %arg3[%c4_6, %c0_7, %c0_8] : memref<27x8x8xf32, #tpu.memory_space<vmem>>, vector<1x8x8xf32>
    %10 = vector.shape_cast %9 : vector<1x8x8xf32> to vector<8x8xf32>
    %cst_9 = arith.constant dense<0.000000e+00> : vector<8x256xf32>
    %11 = tpu.matmul %10, %5, %cst_9 {dimension_numbers = #tpu.dot_dimension_numbers<[1], [0], [0], [1], [0, 0, 1, 1], [], []>} : vector<8x8xf32>, vector<8x256xf32>, vector<8x256xf32> -> vector<8x256xf32>
    %c17_i32 = arith.constant 17 : i32
    %12 = tpu.dynamic_rotate %5 by %c17_i32 dim 1 : vector<8x256xf32>, i32 -> vector<8x256xf32>
    %c0_10 = arith.constant 0 : index
    %c0_11 = arith.constant 0 : index
    %13 = vector.load %arg6[%c0_10, %c0_11] : memref<27x256xf32, #tpu.memory_space<vmem>>, vector<1x256xf32>
    %14 = vector.broadcast %13 : vector<1x256xf32> to vector<8x256xf32>
    %15 = arith.mulf %12, %14 : vector<8x256xf32>
    %c0_12 = arith.constant 0 : index
    %c0_13 = arith.constant 0 : index
    %c0_14 = arith.constant 0 : index
    %16 = vector.load %arg3[%c0_12, %c0_13, %c0_14] : memref<27x8x8xf32, #tpu.memory_space<vmem>>, vector<1x8x8xf32>
    %17 = vector.shape_cast %16 : vector<1x8x8xf32> to vector<8x8xf32>
    %cst_15 = arith.constant dense<0.000000e+00> : vector<8x256xf32>
    %18 = tpu.matmul %17, %15, %cst_15 {dimension_numbers = #tpu.dot_dimension_numbers<[1], [0], [0], [1], [0, 0, 1, 1], [], []>} : vector<8x8xf32>, vector<8x256xf32>, vector<8x256xf32> -> vector<8x256xf32>
    %19 = arith.addf %11, %18 : vector<8x256xf32>
    %c16_i32 = arith.constant 16 : i32
    %20 = tpu.dynamic_rotate %5 by %c16_i32 dim 1 : vector<8x256xf32>, i32 -> vector<8x256xf32>
    %c1 = arith.constant 1 : index
    %c0_16 = arith.constant 0 : index
    %21 = vector.load %arg6[%c1, %c0_16] : memref<27x256xf32, #tpu.memory_space<vmem>>, vector<1x256xf32>
    %22 = vector.broadcast %21 : vector<1x256xf32> to vector<8x256xf32>
    %23 = arith.mulf %20, %22 : vector<8x256xf32>
    %c1_17 = arith.constant 1 : index
    %c0_18 = arith.constant 0 : index
    %c0_19 = arith.constant 0 : index
    %24 = vector.load %arg3[%c1_17, %c0_18, %c0_19] : memref<27x8x8xf32, #tpu.memory_space<vmem>>, vector<1x8x8xf32>
    %25 = vector.shape_cast %24 : vector<1x8x8xf32> to vector<8x8xf32>
    %cst_20 = arith.constant dense<0.000000e+00> : vector<8x256xf32>
    %26 = tpu.matmul %25, %23, %cst_20 {dimension_numbers = #tpu.dot_dimension_numbers<[1], [0], [0], [1], [0, 0, 1, 1], [], []>} : vector<8x8xf32>, vector<8x256xf32>, vector<8x256xf32> -> vector<8x256xf32>
    %27 = arith.addf %19, %26 : vector<8x256xf32>
    %c15_i32 = arith.constant 15 : i32
    %28 = tpu.dynamic_rotate %5 by %c15_i32 dim 1 : vector<8x256xf32>, i32 -> vector<8x256xf32>
    %c2 = arith.constant 2 : index
    %c0_21 = arith.constant 0 : index
    %29 = vector.load %arg6[%c2, %c0_21] : memref<27x256xf32, #tpu.memory_space<vmem>>, vector<1x256xf32>
    %30 = vector.broadcast %29 : vector<1x256xf32> to vector<8x256xf32>
    %31 = arith.mulf %28, %30 : vector<8x256xf32>
    %c2_22 = arith.constant 2 : index
    %c0_23 = arith.constant 0 : index
    %c0_24 = arith.constant 0 : index
    %32 = vector.load %arg3[%c2_22, %c0_23, %c0_24] : memref<27x8x8xf32, #tpu.memory_space<vmem>>, vector<1x8x8xf32>
    %33 = vector.shape_cast %32 : vector<1x8x8xf32> to vector<8x8xf32>
    %cst_25 = arith.constant dense<0.000000e+00> : vector<8x256xf32>
    %34 = tpu.matmul %33, %31, %cst_25 {dimension_numbers = #tpu.dot_dimension_numbers<[1], [0], [0], [1], [0, 0, 1, 1], [], []>} : vector<8x8xf32>, vector<8x256xf32>, vector<8x256xf32> -> vector<8x256xf32>
    %35 = arith.addf %27, %34 : vector<8x256xf32>
    %c1_i32 = arith.constant 1 : i32
    %36 = tpu.dynamic_rotate %5 by %c1_i32 dim 1 : vector<8x256xf32>, i32 -> vector<8x256xf32>
    %c3 = arith.constant 3 : index
    %c0_26 = arith.constant 0 : index
    %37 = vector.load %arg6[%c3, %c0_26] : memref<27x256xf32, #tpu.memory_space<vmem>>, vector<1x256xf32>
    %38 = vector.broadcast %37 : vector<1x256xf32> to vector<8x256xf32>
    %39 = arith.mulf %36, %38 : vector<8x256xf32>
    %c3_27 = arith.constant 3 : index
    %c0_28 = arith.constant 0 : index
    %c0_29 = arith.constant 0 : index
    %40 = vector.load %arg3[%c3_27, %c0_28, %c0_29] : memref<27x8x8xf32, #tpu.memory_space<vmem>>, vector<1x8x8xf32>
    %41 = vector.shape_cast %40 : vector<1x8x8xf32> to vector<8x8xf32>
    %cst_30 = arith.constant dense<0.000000e+00> : vector<8x256xf32>
    %42 = tpu.matmul %41, %39, %cst_30 {dimension_numbers = #tpu.dot_dimension_numbers<[1], [0], [0], [1], [0, 0, 1, 1], [], []>} : vector<8x8xf32>, vector<8x256xf32>, vector<8x256xf32> -> vector<8x256xf32>
    %43 = arith.addf %35, %42 : vector<8x256xf32>
    %c255_i32 = arith.constant 255 : i32
    %44 = tpu.dynamic_rotate %5 by %c255_i32 dim 1 : vector<8x256xf32>, i32 -> vector<8x256xf32>
    %c5 = arith.constant 5 : index
    %c0_31 = arith.constant 0 : index
    %45 = vector.load %arg6[%c5, %c0_31] : memref<27x256xf32, #tpu.memory_space<vmem>>, vector<1x256xf32>
    %46 = vector.broadcast %45 : vector<1x256xf32> to vector<8x256xf32>
    %47 = arith.mulf %44, %46 : vector<8x256xf32>
    %c5_32 = arith.constant 5 : index
    %c0_33 = arith.constant 0 : index
    %c0_34 = arith.constant 0 : index
    %48 = vector.load %arg3[%c5_32, %c0_33, %c0_34] : memref<27x8x8xf32, #tpu.memory_space<vmem>>, vector<1x8x8xf32>
    %49 = vector.shape_cast %48 : vector<1x8x8xf32> to vector<8x8xf32>
    %cst_35 = arith.constant dense<0.000000e+00> : vector<8x256xf32>
    %50 = tpu.matmul %49, %47, %cst_35 {dimension_numbers = #tpu.dot_dimension_numbers<[1], [0], [0], [1], [0, 0, 1, 1], [], []>} : vector<8x8xf32>, vector<8x256xf32>, vector<8x256xf32> -> vector<8x256xf32>
    %51 = arith.addf %43, %50 : vector<8x256xf32>
    %c241_i32 = arith.constant 241 : i32
    %52 = tpu.dynamic_rotate %5 by %c241_i32 dim 1 : vector<8x256xf32>, i32 -> vector<8x256xf32>
    %c6 = arith.constant 6 : index
    %c0_36 = arith.constant 0 : index
    %53 = vector.load %arg6[%c6, %c0_36] : memref<27x256xf32, #tpu.memory_space<vmem>>, vector<1x256xf32>
    %54 = vector.broadcast %53 : vector<1x256xf32> to vector<8x256xf32>
    %55 = arith.mulf %52, %54 : vector<8x256xf32>
    %c6_37 = arith.constant 6 : index
    %c0_38 = arith.constant 0 : index
    %c0_39 = arith.constant 0 : index
    %56 = vector.load %arg3[%c6_37, %c0_38, %c0_39] : memref<27x8x8xf32, #tpu.memory_space<vmem>>, vector<1x8x8xf32>
    %57 = vector.shape_cast %56 : vector<1x8x8xf32> to vector<8x8xf32>
    %cst_40 = arith.constant dense<0.000000e+00> : vector<8x256xf32>
    %58 = tpu.matmul %57, %55, %cst_40 {dimension_numbers = #tpu.dot_dimension_numbers<[1], [0], [0], [1], [0, 0, 1, 1], [], []>} : vector<8x8xf32>, vector<8x256xf32>, vector<8x256xf32> -> vector<8x256xf32>
    %59 = arith.addf %51, %58 : vector<8x256xf32>
    %c240_i32 = arith.constant 240 : i32
    %60 = tpu.dynamic_rotate %5 by %c240_i32 dim 1 : vector<8x256xf32>, i32 -> vector<8x256xf32>
    %c7 = arith.constant 7 : index
    %c0_41 = arith.constant 0 : index
    %61 = vector.load %arg6[%c7, %c0_41] : memref<27x256xf32, #tpu.memory_space<vmem>>, vector<1x256xf32>
    %62 = vector.broadcast %61 : vector<1x256xf32> to vector<8x256xf32>
    %63 = arith.mulf %60, %62 : vector<8x256xf32>
    %c7_42 = arith.constant 7 : index
    %c0_43 = arith.constant 0 : index
    %c0_44 = arith.constant 0 : index
    %64 = vector.load %arg3[%c7_42, %c0_43, %c0_44] : memref<27x8x8xf32, #tpu.memory_space<vmem>>, vector<1x8x8xf32>
    %65 = vector.shape_cast %64 : vector<1x8x8xf32> to vector<8x8xf32>
    %cst_45 = arith.constant dense<0.000000e+00> : vector<8x256xf32>
    %66 = tpu.matmul %65, %63, %cst_45 {dimension_numbers = #tpu.dot_dimension_numbers<[1], [0], [0], [1], [0, 0, 1, 1], [], []>} : vector<8x8xf32>, vector<8x256xf32>, vector<8x256xf32> -> vector<8x256xf32>
    %67 = arith.addf %59, %66 : vector<8x256xf32>
    %c239_i32 = arith.constant 239 : i32
    %68 = tpu.dynamic_rotate %5 by %c239_i32 dim 1 : vector<8x256xf32>, i32 -> vector<8x256xf32>
    %c8 = arith.constant 8 : index
    %c0_46 = arith.constant 0 : index
    %69 = vector.load %arg6[%c8, %c0_46] : memref<27x256xf32, #tpu.memory_space<vmem>>, vector<1x256xf32>
    %70 = vector.broadcast %69 : vector<1x256xf32> to vector<8x256xf32>
    %71 = arith.mulf %68, %70 : vector<8x256xf32>
    %c8_47 = arith.constant 8 : index
    %c0_48 = arith.constant 0 : index
    %c0_49 = arith.constant 0 : index
    %72 = vector.load %arg3[%c8_47, %c0_48, %c0_49] : memref<27x8x8xf32, #tpu.memory_space<vmem>>, vector<1x8x8xf32>
    %73 = vector.shape_cast %72 : vector<1x8x8xf32> to vector<8x8xf32>
    %cst_50 = arith.constant dense<0.000000e+00> : vector<8x256xf32>
    %74 = tpu.matmul %73, %71, %cst_50 {dimension_numbers = #tpu.dot_dimension_numbers<[1], [0], [0], [1], [0, 0, 1, 1], [], []>} : vector<8x8xf32>, vector<8x256xf32>, vector<8x256xf32> -> vector<8x256xf32>
    %75 = arith.addf %67, %74 : vector<8x256xf32>
    %c0_51 = arith.constant 0 : index
    %c1_52 = arith.constant 1 : index
    %76 = vector.load %arg5[%c0_51, %c1_52] : memref<8x5xf32, #tpu.memory_space<vmem>>, vector<8x1xf32>
    %77 = vector.broadcast %76 : vector<8x1xf32> to vector<8x256xf32>
    %78 = arith.addf %75, %77 : vector<8x256xf32>
    %c0_53 = arith.constant 0 : index
    %c0_54 = arith.constant 0 : index
    %c0_55 = arith.constant 0 : index
    %79 = vector.load %arg4[%c0_53, %c0_54, %c0_55] : memref<3x8x8xf32, #tpu.memory_space<vmem>>, vector<1x8x8xf32>
    %80 = vector.shape_cast %79 : vector<1x8x8xf32> to vector<8x8xf32>
    %cst_56 = arith.constant dense<0.000000e+00> : vector<8x256xf32>
    %81 = tpu.matmul %80, %78, %cst_56 {dimension_numbers = #tpu.dot_dimension_numbers<[1], [0], [0], [1], [0, 0, 1, 1], [], []>} : vector<8x8xf32>, vector<8x256xf32>, vector<8x256xf32> -> vector<8x256xf32>
    %82 = arith.addf %8, %81 : vector<8x256xf32>
    %c13 = arith.constant 13 : index
    %c0_57 = arith.constant 0 : index
    %c0_58 = arith.constant 0 : index
    %83 = vector.load %arg3[%c13, %c0_57, %c0_58] : memref<27x8x8xf32, #tpu.memory_space<vmem>>, vector<1x8x8xf32>
    %84 = vector.shape_cast %83 : vector<1x8x8xf32> to vector<8x8xf32>
    %cst_59 = arith.constant dense<0.000000e+00> : vector<8x256xf32>
    %85 = tpu.matmul %84, %78, %cst_59 {dimension_numbers = #tpu.dot_dimension_numbers<[1], [0], [0], [1], [0, 0, 1, 1], [], []>} : vector<8x8xf32>, vector<8x256xf32>, vector<8x256xf32> -> vector<8x256xf32>
    %c34_i32 = arith.constant 34 : i32
    %86 = tpu.dynamic_rotate %78 by %c34_i32 dim 1 : vector<8x256xf32>, i32 -> vector<8x256xf32>
    %c9 = arith.constant 9 : index
    %c0_60 = arith.constant 0 : index
    %87 = vector.load %arg6[%c9, %c0_60] : memref<27x256xf32, #tpu.memory_space<vmem>>, vector<1x256xf32>
    %88 = vector.broadcast %87 : vector<1x256xf32> to vector<8x256xf32>
    %89 = arith.mulf %86, %88 : vector<8x256xf32>
    %c9_61 = arith.constant 9 : index
    %c0_62 = arith.constant 0 : index
    %c0_63 = arith.constant 0 : index
    %90 = vector.load %arg3[%c9_61, %c0_62, %c0_63] : memref<27x8x8xf32, #tpu.memory_space<vmem>>, vector<1x8x8xf32>
    %91 = vector.shape_cast %90 : vector<1x8x8xf32> to vector<8x8xf32>
    %cst_64 = arith.constant dense<0.000000e+00> : vector<8x256xf32>
    %92 = tpu.matmul %91, %89, %cst_64 {dimension_numbers = #tpu.dot_dimension_numbers<[1], [0], [0], [1], [0, 0, 1, 1], [], []>} : vector<8x8xf32>, vector<8x256xf32>, vector<8x256xf32> -> vector<8x256xf32>
    %93 = arith.addf %85, %92 : vector<8x256xf32>
    %c32_i32 = arith.constant 32 : i32
    %94 = tpu.dynamic_rotate %78 by %c32_i32 dim 1 : vector<8x256xf32>, i32 -> vector<8x256xf32>
    %c10 = arith.constant 10 : index
    %c0_65 = arith.constant 0 : index
    %95 = vector.load %arg6[%c10, %c0_65] : memref<27x256xf32, #tpu.memory_space<vmem>>, vector<1x256xf32>
    %96 = vector.broadcast %95 : vector<1x256xf32> to vector<8x256xf32>
    %97 = arith.mulf %94, %96 : vector<8x256xf32>
    %c10_66 = arith.constant 10 : index
    %c0_67 = arith.constant 0 : index
    %c0_68 = arith.constant 0 : index
    %98 = vector.load %arg3[%c10_66, %c0_67, %c0_68] : memref<27x8x8xf32, #tpu.memory_space<vmem>>, vector<1x8x8xf32>
    %99 = vector.shape_cast %98 : vector<1x8x8xf32> to vector<8x8xf32>
    %cst_69 = arith.constant dense<0.000000e+00> : vector<8x256xf32>
    %100 = tpu.matmul %99, %97, %cst_69 {dimension_numbers = #tpu.dot_dimension_numbers<[1], [0], [0], [1], [0, 0, 1, 1], [], []>} : vector<8x8xf32>, vector<8x256xf32>, vector<8x256xf32> -> vector<8x256xf32>
    %101 = arith.addf %93, %100 : vector<8x256xf32>
    %c30_i32 = arith.constant 30 : i32
    %102 = tpu.dynamic_rotate %78 by %c30_i32 dim 1 : vector<8x256xf32>, i32 -> vector<8x256xf32>
    %c11 = arith.constant 11 : index
    %c0_70 = arith.constant 0 : index
    %103 = vector.load %arg6[%c11, %c0_70] : memref<27x256xf32, #tpu.memory_space<vmem>>, vector<1x256xf32>
    %104 = vector.broadcast %103 : vector<1x256xf32> to vector<8x256xf32>
    %105 = arith.mulf %102, %104 : vector<8x256xf32>
    %c11_71 = arith.constant 11 : index
    %c0_72 = arith.constant 0 : index
    %c0_73 = arith.constant 0 : index
    %106 = vector.load %arg3[%c11_71, %c0_72, %c0_73] : memref<27x8x8xf32, #tpu.memory_space<vmem>>, vector<1x8x8xf32>
    %107 = vector.shape_cast %106 : vector<1x8x8xf32> to vector<8x8xf32>
    %cst_74 = arith.constant dense<0.000000e+00> : vector<8x256xf32>
    %108 = tpu.matmul %107, %105, %cst_74 {dimension_numbers = #tpu.dot_dimension_numbers<[1], [0], [0], [1], [0, 0, 1, 1], [], []>} : vector<8x8xf32>, vector<8x256xf32>, vector<8x256xf32> -> vector<8x256xf32>
    %109 = arith.addf %101, %108 : vector<8x256xf32>
    %c2_i32 = arith.constant 2 : i32
    %110 = tpu.dynamic_rotate %78 by %c2_i32 dim 1 : vector<8x256xf32>, i32 -> vector<8x256xf32>
    %c12 = arith.constant 12 : index
    %c0_75 = arith.constant 0 : index
    %111 = vector.load %arg6[%c12, %c0_75] : memref<27x256xf32, #tpu.memory_space<vmem>>, vector<1x256xf32>
    %112 = vector.broadcast %111 : vector<1x256xf32> to vector<8x256xf32>
    %113 = arith.mulf %110, %112 : vector<8x256xf32>
    %c12_76 = arith.constant 12 : index
    %c0_77 = arith.constant 0 : index
    %c0_78 = arith.constant 0 : index
    %114 = vector.load %arg3[%c12_76, %c0_77, %c0_78] : memref<27x8x8xf32, #tpu.memory_space<vmem>>, vector<1x8x8xf32>
    %115 = vector.shape_cast %114 : vector<1x8x8xf32> to vector<8x8xf32>
    %cst_79 = arith.constant dense<0.000000e+00> : vector<8x256xf32>
    %116 = tpu.matmul %115, %113, %cst_79 {dimension_numbers = #tpu.dot_dimension_numbers<[1], [0], [0], [1], [0, 0, 1, 1], [], []>} : vector<8x8xf32>, vector<8x256xf32>, vector<8x256xf32> -> vector<8x256xf32>
    %117 = arith.addf %109, %116 : vector<8x256xf32>
    %c254_i32 = arith.constant 254 : i32
    %118 = tpu.dynamic_rotate %78 by %c254_i32 dim 1 : vector<8x256xf32>, i32 -> vector<8x256xf32>
    %c14 = arith.constant 14 : index
    %c0_80 = arith.constant 0 : index
    %119 = vector.load %arg6[%c14, %c0_80] : memref<27x256xf32, #tpu.memory_space<vmem>>, vector<1x256xf32>
    %120 = vector.broadcast %119 : vector<1x256xf32> to vector<8x256xf32>
    %121 = arith.mulf %118, %120 : vector<8x256xf32>
    %c14_81 = arith.constant 14 : index
    %c0_82 = arith.constant 0 : index
    %c0_83 = arith.constant 0 : index
    %122 = vector.load %arg3[%c14_81, %c0_82, %c0_83] : memref<27x8x8xf32, #tpu.memory_space<vmem>>, vector<1x8x8xf32>
    %123 = vector.shape_cast %122 : vector<1x8x8xf32> to vector<8x8xf32>
    %cst_84 = arith.constant dense<0.000000e+00> : vector<8x256xf32>
    %124 = tpu.matmul %123, %121, %cst_84 {dimension_numbers = #tpu.dot_dimension_numbers<[1], [0], [0], [1], [0, 0, 1, 1], [], []>} : vector<8x8xf32>, vector<8x256xf32>, vector<8x256xf32> -> vector<8x256xf32>
    %125 = arith.addf %117, %124 : vector<8x256xf32>
    %c226_i32 = arith.constant 226 : i32
    %126 = tpu.dynamic_rotate %78 by %c226_i32 dim 1 : vector<8x256xf32>, i32 -> vector<8x256xf32>
    %c15 = arith.constant 15 : index
    %c0_85 = arith.constant 0 : index
    %127 = vector.load %arg6[%c15, %c0_85] : memref<27x256xf32, #tpu.memory_space<vmem>>, vector<1x256xf32>
    %128 = vector.broadcast %127 : vector<1x256xf32> to vector<8x256xf32>
    %129 = arith.mulf %126, %128 : vector<8x256xf32>
    %c15_86 = arith.constant 15 : index
    %c0_87 = arith.constant 0 : index
    %c0_88 = arith.constant 0 : index
    %130 = vector.load %arg3[%c15_86, %c0_87, %c0_88] : memref<27x8x8xf32, #tpu.memory_space<vmem>>, vector<1x8x8xf32>
    %131 = vector.shape_cast %130 : vector<1x8x8xf32> to vector<8x8xf32>
    %cst_89 = arith.constant dense<0.000000e+00> : vector<8x256xf32>
    %132 = tpu.matmul %131, %129, %cst_89 {dimension_numbers = #tpu.dot_dimension_numbers<[1], [0], [0], [1], [0, 0, 1, 1], [], []>} : vector<8x8xf32>, vector<8x256xf32>, vector<8x256xf32> -> vector<8x256xf32>
    %133 = arith.addf %125, %132 : vector<8x256xf32>
    %c224_i32 = arith.constant 224 : i32
    %134 = tpu.dynamic_rotate %78 by %c224_i32 dim 1 : vector<8x256xf32>, i32 -> vector<8x256xf32>
    %c16 = arith.constant 16 : index
    %c0_90 = arith.constant 0 : index
    %135 = vector.load %arg6[%c16, %c0_90] : memref<27x256xf32, #tpu.memory_space<vmem>>, vector<1x256xf32>
    %136 = vector.broadcast %135 : vector<1x256xf32> to vector<8x256xf32>
    %137 = arith.mulf %134, %136 : vector<8x256xf32>
    %c16_91 = arith.constant 16 : index
    %c0_92 = arith.constant 0 : index
    %c0_93 = arith.constant 0 : index
    %138 = vector.load %arg3[%c16_91, %c0_92, %c0_93] : memref<27x8x8xf32, #tpu.memory_space<vmem>>, vector<1x8x8xf32>
    %139 = vector.shape_cast %138 : vector<1x8x8xf32> to vector<8x8xf32>
    %cst_94 = arith.constant dense<0.000000e+00> : vector<8x256xf32>
    %140 = tpu.matmul %139, %137, %cst_94 {dimension_numbers = #tpu.dot_dimension_numbers<[1], [0], [0], [1], [0, 0, 1, 1], [], []>} : vector<8x8xf32>, vector<8x256xf32>, vector<8x256xf32> -> vector<8x256xf32>
    %141 = arith.addf %133, %140 : vector<8x256xf32>
    %c222_i32 = arith.constant 222 : i32
    %142 = tpu.dynamic_rotate %78 by %c222_i32 dim 1 : vector<8x256xf32>, i32 -> vector<8x256xf32>
    %c17 = arith.constant 17 : index
    %c0_95 = arith.constant 0 : index
    %143 = vector.load %arg6[%c17, %c0_95] : memref<27x256xf32, #tpu.memory_space<vmem>>, vector<1x256xf32>
    %144 = vector.broadcast %143 : vector<1x256xf32> to vector<8x256xf32>
    %145 = arith.mulf %142, %144 : vector<8x256xf32>
    %c17_96 = arith.constant 17 : index
    %c0_97 = arith.constant 0 : index
    %c0_98 = arith.constant 0 : index
    %146 = vector.load %arg3[%c17_96, %c0_97, %c0_98] : memref<27x8x8xf32, #tpu.memory_space<vmem>>, vector<1x8x8xf32>
    %147 = vector.shape_cast %146 : vector<1x8x8xf32> to vector<8x8xf32>
    %cst_99 = arith.constant dense<0.000000e+00> : vector<8x256xf32>
    %148 = tpu.matmul %147, %145, %cst_99 {dimension_numbers = #tpu.dot_dimension_numbers<[1], [0], [0], [1], [0, 0, 1, 1], [], []>} : vector<8x8xf32>, vector<8x256xf32>, vector<8x256xf32> -> vector<8x256xf32>
    %149 = arith.addf %141, %148 : vector<8x256xf32>
    %c0_100 = arith.constant 0 : index
    %c2_101 = arith.constant 2 : index
    %150 = vector.load %arg5[%c0_100, %c2_101] : memref<8x5xf32, #tpu.memory_space<vmem>>, vector<8x1xf32>
    %151 = vector.broadcast %150 : vector<8x1xf32> to vector<8x256xf32>
    %152 = arith.addf %149, %151 : vector<8x256xf32>
    %c1_102 = arith.constant 1 : index
    %c0_103 = arith.constant 0 : index
    %c0_104 = arith.constant 0 : index
    %153 = vector.load %arg4[%c1_102, %c0_103, %c0_104] : memref<3x8x8xf32, #tpu.memory_space<vmem>>, vector<1x8x8xf32>
    %154 = vector.shape_cast %153 : vector<1x8x8xf32> to vector<8x8xf32>
    %cst_105 = arith.constant dense<0.000000e+00> : vector<8x256xf32>
    %155 = tpu.matmul %154, %152, %cst_105 {dimension_numbers = #tpu.dot_dimension_numbers<[1], [0], [0], [1], [0, 0, 1, 1], [], []>} : vector<8x8xf32>, vector<8x256xf32>, vector<8x256xf32> -> vector<8x256xf32>
    %156 = arith.addf %82, %155 : vector<8x256xf32>
    %c22 = arith.constant 22 : index
    %c0_106 = arith.constant 0 : index
    %c0_107 = arith.constant 0 : index
    %157 = vector.load %arg3[%c22, %c0_106, %c0_107] : memref<27x8x8xf32, #tpu.memory_space<vmem>>, vector<1x8x8xf32>
    %158 = vector.shape_cast %157 : vector<1x8x8xf32> to vector<8x8xf32>
    %cst_108 = arith.constant dense<0.000000e+00> : vector<8x256xf32>
    %159 = tpu.matmul %158, %152, %cst_108 {dimension_numbers = #tpu.dot_dimension_numbers<[1], [0], [0], [1], [0, 0, 1, 1], [], []>} : vector<8x8xf32>, vector<8x256xf32>, vector<8x256xf32> -> vector<8x256xf32>
    %c51_i32 = arith.constant 51 : i32
    %160 = tpu.dynamic_rotate %152 by %c51_i32 dim 1 : vector<8x256xf32>, i32 -> vector<8x256xf32>
    %c18 = arith.constant 18 : index
    %c0_109 = arith.constant 0 : index
    %161 = vector.load %arg6[%c18, %c0_109] : memref<27x256xf32, #tpu.memory_space<vmem>>, vector<1x256xf32>
    %162 = vector.broadcast %161 : vector<1x256xf32> to vector<8x256xf32>
    %163 = arith.mulf %160, %162 : vector<8x256xf32>
    %c18_110 = arith.constant 18 : index
    %c0_111 = arith.constant 0 : index
    %c0_112 = arith.constant 0 : index
    %164 = vector.load %arg3[%c18_110, %c0_111, %c0_112] : memref<27x8x8xf32, #tpu.memory_space<vmem>>, vector<1x8x8xf32>
    %165 = vector.shape_cast %164 : vector<1x8x8xf32> to vector<8x8xf32>
    %cst_113 = arith.constant dense<0.000000e+00> : vector<8x256xf32>
    %166 = tpu.matmul %165, %163, %cst_113 {dimension_numbers = #tpu.dot_dimension_numbers<[1], [0], [0], [1], [0, 0, 1, 1], [], []>} : vector<8x8xf32>, vector<8x256xf32>, vector<8x256xf32> -> vector<8x256xf32>
    %167 = arith.addf %159, %166 : vector<8x256xf32>
    %c48_i32 = arith.constant 48 : i32
    %168 = tpu.dynamic_rotate %152 by %c48_i32 dim 1 : vector<8x256xf32>, i32 -> vector<8x256xf32>
    %c19 = arith.constant 19 : index
    %c0_114 = arith.constant 0 : index
    %169 = vector.load %arg6[%c19, %c0_114] : memref<27x256xf32, #tpu.memory_space<vmem>>, vector<1x256xf32>
    %170 = vector.broadcast %169 : vector<1x256xf32> to vector<8x256xf32>
    %171 = arith.mulf %168, %170 : vector<8x256xf32>
    %c19_115 = arith.constant 19 : index
    %c0_116 = arith.constant 0 : index
    %c0_117 = arith.constant 0 : index
    %172 = vector.load %arg3[%c19_115, %c0_116, %c0_117] : memref<27x8x8xf32, #tpu.memory_space<vmem>>, vector<1x8x8xf32>
    %173 = vector.shape_cast %172 : vector<1x8x8xf32> to vector<8x8xf32>
    %cst_118 = arith.constant dense<0.000000e+00> : vector<8x256xf32>
    %174 = tpu.matmul %173, %171, %cst_118 {dimension_numbers = #tpu.dot_dimension_numbers<[1], [0], [0], [1], [0, 0, 1, 1], [], []>} : vector<8x8xf32>, vector<8x256xf32>, vector<8x256xf32> -> vector<8x256xf32>
    %175 = arith.addf %167, %174 : vector<8x256xf32>
    %c45_i32 = arith.constant 45 : i32
    %176 = tpu.dynamic_rotate %152 by %c45_i32 dim 1 : vector<8x256xf32>, i32 -> vector<8x256xf32>
    %c20 = arith.constant 20 : index
    %c0_119 = arith.constant 0 : index
    %177 = vector.load %arg6[%c20, %c0_119] : memref<27x256xf32, #tpu.memory_space<vmem>>, vector<1x256xf32>
    %178 = vector.broadcast %177 : vector<1x256xf32> to vector<8x256xf32>
    %179 = arith.mulf %176, %178 : vector<8x256xf32>
    %c20_120 = arith.constant 20 : index
    %c0_121 = arith.constant 0 : index
    %c0_122 = arith.constant 0 : index
    %180 = vector.load %arg3[%c20_120, %c0_121, %c0_122] : memref<27x8x8xf32, #tpu.memory_space<vmem>>, vector<1x8x8xf32>
    %181 = vector.shape_cast %180 : vector<1x8x8xf32> to vector<8x8xf32>
    %cst_123 = arith.constant dense<0.000000e+00> : vector<8x256xf32>
    %182 = tpu.matmul %181, %179, %cst_123 {dimension_numbers = #tpu.dot_dimension_numbers<[1], [0], [0], [1], [0, 0, 1, 1], [], []>} : vector<8x8xf32>, vector<8x256xf32>, vector<8x256xf32> -> vector<8x256xf32>
    %183 = arith.addf %175, %182 : vector<8x256xf32>
    %c3_i32 = arith.constant 3 : i32
    %184 = tpu.dynamic_rotate %152 by %c3_i32 dim 1 : vector<8x256xf32>, i32 -> vector<8x256xf32>
    %c21 = arith.constant 21 : index
    %c0_124 = arith.constant 0 : index
    %185 = vector.load %arg6[%c21, %c0_124] : memref<27x256xf32, #tpu.memory_space<vmem>>, vector<1x256xf32>
    %186 = vector.broadcast %185 : vector<1x256xf32> to vector<8x256xf32>
    %187 = arith.mulf %184, %186 : vector<8x256xf32>
    %c21_125 = arith.constant 21 : index
    %c0_126 = arith.constant 0 : index
    %c0_127 = arith.constant 0 : index
    %188 = vector.load %arg3[%c21_125, %c0_126, %c0_127] : memref<27x8x8xf32, #tpu.memory_space<vmem>>, vector<1x8x8xf32>
    %189 = vector.shape_cast %188 : vector<1x8x8xf32> to vector<8x8xf32>
    %cst_128 = arith.constant dense<0.000000e+00> : vector<8x256xf32>
    %190 = tpu.matmul %189, %187, %cst_128 {dimension_numbers = #tpu.dot_dimension_numbers<[1], [0], [0], [1], [0, 0, 1, 1], [], []>} : vector<8x8xf32>, vector<8x256xf32>, vector<8x256xf32> -> vector<8x256xf32>
    %191 = arith.addf %183, %190 : vector<8x256xf32>
    %c253_i32 = arith.constant 253 : i32
    %192 = tpu.dynamic_rotate %152 by %c253_i32 dim 1 : vector<8x256xf32>, i32 -> vector<8x256xf32>
    %c23 = arith.constant 23 : index
    %c0_129 = arith.constant 0 : index
    %193 = vector.load %arg6[%c23, %c0_129] : memref<27x256xf32, #tpu.memory_space<vmem>>, vector<1x256xf32>
    %194 = vector.broadcast %193 : vector<1x256xf32> to vector<8x256xf32>
    %195 = arith.mulf %192, %194 : vector<8x256xf32>
    %c23_130 = arith.constant 23 : index
    %c0_131 = arith.constant 0 : index
    %c0_132 = arith.constant 0 : index
    %196 = vector.load %arg3[%c23_130, %c0_131, %c0_132] : memref<27x8x8xf32, #tpu.memory_space<vmem>>, vector<1x8x8xf32>
    %197 = vector.shape_cast %196 : vector<1x8x8xf32> to vector<8x8xf32>
    %cst_133 = arith.constant dense<0.000000e+00> : vector<8x256xf32>
    %198 = tpu.matmul %197, %195, %cst_133 {dimension_numbers = #tpu.dot_dimension_numbers<[1], [0], [0], [1], [0, 0, 1, 1], [], []>} : vector<8x8xf32>, vector<8x256xf32>, vector<8x256xf32> -> vector<8x256xf32>
    %199 = arith.addf %191, %198 : vector<8x256xf32>
    %c211_i32 = arith.constant 211 : i32
    %200 = tpu.dynamic_rotate %152 by %c211_i32 dim 1 : vector<8x256xf32>, i32 -> vector<8x256xf32>
    %c24 = arith.constant 24 : index
    %c0_134 = arith.constant 0 : index
    %201 = vector.load %arg6[%c24, %c0_134] : memref<27x256xf32, #tpu.memory_space<vmem>>, vector<1x256xf32>
    %202 = vector.broadcast %201 : vector<1x256xf32> to vector<8x256xf32>
    %203 = arith.mulf %200, %202 : vector<8x256xf32>
    %c24_135 = arith.constant 24 : index
    %c0_136 = arith.constant 0 : index
    %c0_137 = arith.constant 0 : index
    %204 = vector.load %arg3[%c24_135, %c0_136, %c0_137] : memref<27x8x8xf32, #tpu.memory_space<vmem>>, vector<1x8x8xf32>
    %205 = vector.shape_cast %204 : vector<1x8x8xf32> to vector<8x8xf32>
    %cst_138 = arith.constant dense<0.000000e+00> : vector<8x256xf32>
    %206 = tpu.matmul %205, %203, %cst_138 {dimension_numbers = #tpu.dot_dimension_numbers<[1], [0], [0], [1], [0, 0, 1, 1], [], []>} : vector<8x8xf32>, vector<8x256xf32>, vector<8x256xf32> -> vector<8x256xf32>
    %207 = arith.addf %199, %206 : vector<8x256xf32>
    %c208_i32 = arith.constant 208 : i32
    %208 = tpu.dynamic_rotate %152 by %c208_i32 dim 1 : vector<8x256xf32>, i32 -> vector<8x256xf32>
    %c25 = arith.constant 25 : index
    %c0_139 = arith.constant 0 : index
    %209 = vector.load %arg6[%c25, %c0_139] : memref<27x256xf32, #tpu.memory_space<vmem>>, vector<1x256xf32>
    %210 = vector.broadcast %209 : vector<1x256xf32> to vector<8x256xf32>
    %211 = arith.mulf %208, %210 : vector<8x256xf32>
    %c25_140 = arith.constant 25 : index
    %c0_141 = arith.constant 0 : index
    %c0_142 = arith.constant 0 : index
    %212 = vector.load %arg3[%c25_140, %c0_141, %c0_142] : memref<27x8x8xf32, #tpu.memory_space<vmem>>, vector<1x8x8xf32>
    %213 = vector.shape_cast %212 : vector<1x8x8xf32> to vector<8x8xf32>
    %cst_143 = arith.constant dense<0.000000e+00> : vector<8x256xf32>
    %214 = tpu.matmul %213, %211, %cst_143 {dimension_numbers = #tpu.dot_dimension_numbers<[1], [0], [0], [1], [0, 0, 1, 1], [], []>} : vector<8x8xf32>, vector<8x256xf32>, vector<8x256xf32> -> vector<8x256xf32>
    %215 = arith.addf %207, %214 : vector<8x256xf32>
    %c205_i32 = arith.constant 205 : i32
    %216 = tpu.dynamic_rotate %152 by %c205_i32 dim 1 : vector<8x256xf32>, i32 -> vector<8x256xf32>
    %c26 = arith.constant 26 : index
    %c0_144 = arith.constant 0 : index
    %217 = vector.load %arg6[%c26, %c0_144] : memref<27x256xf32, #tpu.memory_space<vmem>>, vector<1x256xf32>
    %218 = vector.broadcast %217 : vector<1x256xf32> to vector<8x256xf32>
    %219 = arith.mulf %216, %218 : vector<8x256xf32>
    %c26_145 = arith.constant 26 : index
    %c0_146 = arith.constant 0 : index
    %c0_147 = arith.constant 0 : index
    %220 = vector.load %arg3[%c26_145, %c0_146, %c0_147] : memref<27x8x8xf32, #tpu.memory_space<vmem>>, vector<1x8x8xf32>
    %221 = vector.shape_cast %220 : vector<1x8x8xf32> to vector<8x8xf32>
    %cst_148 = arith.constant dense<0.000000e+00> : vector<8x256xf32>
    %222 = tpu.matmul %221, %219, %cst_148 {dimension_numbers = #tpu.dot_dimension_numbers<[1], [0], [0], [1], [0, 0, 1, 1], [], []>} : vector<8x8xf32>, vector<8x256xf32>, vector<8x256xf32> -> vector<8x256xf32>
    %223 = arith.addf %215, %222 : vector<8x256xf32>
    %c0_149 = arith.constant 0 : index
    %c3_150 = arith.constant 3 : index
    %224 = vector.load %arg5[%c0_149, %c3_150] : memref<8x5xf32, #tpu.memory_space<vmem>>, vector<8x1xf32>
    %225 = vector.broadcast %224 : vector<8x1xf32> to vector<8x256xf32>
    %226 = arith.addf %223, %225 : vector<8x256xf32>
    %c2_151 = arith.constant 2 : index
    %c0_152 = arith.constant 0 : index
    %c0_153 = arith.constant 0 : index
    %227 = vector.load %arg4[%c2_151, %c0_152, %c0_153] : memref<3x8x8xf32, #tpu.memory_space<vmem>>, vector<1x8x8xf32>
    %228 = vector.shape_cast %227 : vector<1x8x8xf32> to vector<8x8xf32>
    %cst_154 = arith.constant dense<0.000000e+00> : vector<8x256xf32>
    %229 = tpu.matmul %228, %226, %cst_154 {dimension_numbers = #tpu.dot_dimension_numbers<[1], [0], [0], [1], [0, 0, 1, 1], [], []>} : vector<8x8xf32>, vector<8x256xf32>, vector<8x256xf32> -> vector<8x256xf32>
    %230 = arith.addf %156, %229 : vector<8x256xf32>
    %c0_155 = arith.constant 0 : index
    %c0_156 = arith.constant 0 : index
    %231 = vector.load %arg7[%c0_155, %c0_156] : memref<8x256xf32, #tpu.memory_space<vmem>>, vector<8x256xf32>
    tpu.vector_store %arg7[%c0_155, %c0_156], %230 {strides = array<i32>} : memref<8x256xf32, #tpu.memory_space<vmem>>, vector<8x256xf32>,
    return
  }
  func.func @transform_0(%arg0: i32) -> (i32, i32) {
    %c0_i32 = arith.constant 0 : i32
    %c0_i32_0 = arith.constant 0 : i32
    return %c0_i32, %arg0 : i32, i32
  }
  func.func @transform_1(%arg0: i32) -> (i32, i32) {
    %c0_i32 = arith.constant 0 : i32
    %c0_i32_0 = arith.constant 0 : i32
    %c0_i32_1 = arith.constant 0 : i32
    return %c0_i32, %c0_i32_0 : i32, i32
  }
  func.func @transform_2(%arg0: i32) -> (i32, i32, i32) {
    %c0_i32 = arith.constant 0 : i32
    %c0_i32_0 = arith.constant 0 : i32
    %c0_i32_1 = arith.constant 0 : i32
    %c0_i32_2 = arith.constant 0 : i32
    return %c0_i32, %c0_i32_0, %c0_i32_1 : i32, i32, i32
  }
  func.func @transform_3(%arg0: i32) -> (i32, i32, i32) {
    %c0_i32 = arith.constant 0 : i32
    %c0_i32_0 = arith.constant 0 : i32
    %c0_i32_1 = arith.constant 0 : i32
    %c0_i32_2 = arith.constant 0 : i32
    return %c0_i32, %c0_i32_0, %c0_i32_1 : i32, i32, i32
  }
  func.func @transform_4(%arg0: i32) -> (i32, i32) {
    %c0_i32 = arith.constant 0 : i32
    %c0_i32_0 = arith.constant 0 : i32
    %c0_i32_1 = arith.constant 0 : i32
    return %c0_i32, %c0_i32_0 : i32, i32
  }
  func.func @transform_5(%arg0: i32) -> (i32, i32) {
    %c0_i32 = arith.constant 0 : i32
    %c0_i32_0 = arith.constant 0 : i32
    %c0_i32_1 = arith.constant 0 : i32
    return %c0_i32, %c0_i32_0 : i32, i32
  }
  func.func @transform_6(%arg0: i32) -> (i32, i32) {
    %c0_i32 = arith.constant 0 : i32
    %c0_i32_0 = arith.constant 0 : i32
    return %c0_i32, %arg0 : i32, i32
  }
}

</mosaic_0001>

<bundles_post_ra>
// kernel: tpu_custom_call.1
= control target key start
LH: loop header
LB: loop body
LE: loop exit
PB: predicated region body
PF: predicated region fallthrough
CT: control target
= control target key end

     0   :  { %11 = vsyncpa [#allocation3], 0  ;;  %s4151_s0 = inlined_call_operand.vmem [shape: f32[8,512], index: 0, kind: input, shape index: {}]   ;;  %s4152_s1 = inlined_call_operand.vmem [shape: f32[8,8], index: 1, kind: input, shape index: {}]   ;;  %s4153_s2 = inlined_call_operand.vmem [shape: f32[27,8,8], index: 2, kind: input, shape index: {}]   ;;  %s4154_s3 = inlined_call_operand.vmem [shape: f32[3,8,8], index: 3, kind: input, shape index: {}]   ;;  %s4155_s4 = inlined_call_operand.vmem [shape: f32[8,5], index: 4, kind: input, shape index: {}]   ;;  %s4156_s5 = inlined_call_operand.vmem [shape: f32[27,256], index: 5, kind: input, shape index: {}]   ;;  %s4157_s6 = inlined_call_operand.hbm [shape: f32[8,512], index: 6, kind: output, shape index: {}]  }
   0x1   :  { %13 = vsyncpa [#allocation3 + $0x1], 0  ;;  %s3645_s21 = smov 0   ;;  %s3647_s22 = smov 0  }
   0x2   :  { %s3649_s23 = smov 0   ;;  %s3651_s24 = smov 0  }
   0x3 LB: > { %s3666_s25 = sadd.s32 4294967295, %s3577_s24   ;;  %s3292_s26 = sadd.s32 4294967294, %s3577_s24   ;;  %s3577_s24 = sphi %s3651_s24, %s4163_s24   ;;  %s3573_s23 = sphi %s3649_s23, %s4162_s23   ;;  %s3569_s22 = sphi %s3647_s22, %s4161_s22   ;;  %s3565_s21 = sphi %s3645_s21, %s4160_s21  }
   0x4   : > { %s3670_s27 = sadd.s32 1, %s3577_s24   ;;  %s157_s28 = sadd.s32 1, %s3573_s23 }
   0x5   : > { %s154_s29 = ssub.s32 %s3577_s24, %s3670_s27  ;;  %p167_p0 = scmp.ne.s32.totalorder %s3573_s23, %s3569_s22 }
   0x6   : > { %p155_p1 = scmp.eq.s32.totalorder %s154_s29, 0  ;;  %p168_p2 = scmp.eq.s32.totalorder %s3666_s25, 1 }
   0x7   : > { %p173_p3 = scmp.ne.s32.totalorder %s3569_s22, %s3565_s21  ;;  %p174_p4 = scmp.eq.s32.totalorder %s3292_s26, 1 }
   0x8   : > { %s3681_s30 = scalar_select %p155_p1, %s3573_s23, %s157_s28  }
   0x9   : > { %p3683_p5 = por %p168_p2, %p167_p0  ;;  %p3687_p6 = por %p174_p4, %p173_p3 }
   0xa   : > { %p3295_p7 = scmp.ge.s32.totalorder %s3577_s24, 1  ;;  %p216_p8 = scmp.lt.s32.totalorder %s3577_s24, 3 }
   0xc   : > { %p217_p9 = pnand %p3295_p7, %p216_p8 }
   0xd   : > { %s3297_s9 = sshll.u32 (!%p217_p9), %s3666_s25, 1  ;;  %v3697_v0 = vld [vmem:[%s4155_s4] sm:$0xff] (!%p217_p9)  ;;  %v3579_v1 = vmov (!%p217_p9), 0.0   ;;  %v3580_v2 = vmov (!%p217_p9), 0   ;;  %vm262_vm0 = vcmask (!%p217_p9), 64512   ;;  %s3581_s18 = smov (!%p217_p9), 16   ;;  %v349_v12 = vlaneseq (!%p217_p9) }
   0xe   : > { %220 = sbr.rel (%p217_p9) target bundleno = 1659 (0x67b), region = 44  ;;  %p247_p10 = scmp.lt.s32.totalorder (!%p217_p9), %s3297_s9, 3  ;;  %330 = vmatprep.mubr.f32.mxu0 (!%p217_p9), %v3579_v1  ;;  %3510 = vset.pattern.permute.xlu0 (!%p217_p9), %v3580_v2  ;;  %v255_v5 = vld [vmem:[%s4152_s1] sm:$0xff] (!%p217_p9)  ;;  %v3589_v11 = vmov (!%p217_p9), 1   ;;  %v3304_v30 = vld [vmem:[%s4153_s2 + $0x8] sm:$0xff] (!%p217_p9)  ;;  %v3307_v47 = vld [vmem:[%s4153_s2 + $0x10] sm:$0xff] (!%p217_p9) }
   0xf   : > { %259 = vperm.xlu0 (!%p217_p9), %3510, %v3697_v0   ;;  %608 = vmatprep.mubr.f32.mxu1 (!%p217_p9), %v3579_v1  ;;  %s3582_s19 = smov (!%p217_p9), 15   ;;  %s3583_s20 = smov (!%p217_p9), 1   ;;  %v357_v13 = vshrl.u32 (!%p217_p9), %v349_v12, 7  ;;  %v3731_v14 = vand.u32 (!%p217_p9), 127, %v349_v12  ;;  %v3310_v63 = vld [vmem:[%s4153_s2 + $0x18] sm:$0xff] (!%p217_p9)  ;;  %v368_v12 = vld [vmem:[%s4153_s2] sm:$0xff] (!%p217_p9) }
  0x10   : > { %s3584_s26 = smov (!%p217_p9), 127   ;;  %s3585_s28 = smov (!%p217_p9), 113   ;;  %3511 = vset.pattern.permute.xlu1 (!%p217_p9), %v3589_v11  ;;  %v3303_v17 = vld [vmem:[%s4156_s5 + $0x1] ss:$8 sm:$0x3] (!%p217_p9) }
  0x11   : > { %s3586_s29 = smov (!%p217_p9), 17   ;;  %s3588_s10 = smov (!%p217_p9), 111   ;;  %v3733_v15 = vsub.s32 (!%p217_p9), 0, %v357_v13  ;;  %v3735_v16 = vsub.s32 (!%p217_p9), 1, %v357_v13  ;;  %vm521_vm1 = vcmp.lt.s32.totalorder (!%p217_p9), %v3731_v14, 16  ;;  %vm621_vm2 = vcmp.lt.s32.totalorder (!%p217_p9), %v3731_v14, 15 }
  0x12   : > { %v3306_v21 = vld [vmem:[%s4156_s5 + $0x2] ss:$8 sm:$0x3] (!%p217_p9)  ;;  %v3309_v31 = vld [vmem:[%s4156_s5 + $0x3] ss:$8 sm:$0x3] (!%p217_p9) }
  0x13   : > { %v534_v18 = vrot.slane (!%p217_p9), %v3303_v17, %v3735_v16  ;;  %v530_v19 = vrot.slane (!%p217_p9), %v3303_v17, %v3733_v15  ;;  %v630_v25 = vrot.slane (!%p217_p9), %v3306_v21, %v3733_v15  ;;  %v634_v26 = vrot.slane (!%p217_p9), %v3306_v21, %v3735_v16  ;;  %v3312_v39 = vld [vmem:[%s4156_s5 + $0x5] ss:$8 sm:$0x3] (!%p217_p9)  ;;  %v3315_v52 = vld [vmem:[%s4156_s5 + $0x6] ss:$8 sm:$0x3] (!%p217_p9) }
  0x14   : > { %vm721_vm3 = vcmp.lt.s32.totalorder (!%p217_p9), %v3731_v14, 1  ;;  %v734_v37 = vrot.slane (!%p217_p9), %v3309_v31, %v3735_v16  ;;  %v730_v41 = vrot.slane (!%p217_p9), %v3309_v31, %v3733_v15  ;;  %vm821_vm4 = vcmp.lt.s32.totalorder (!%p217_p9), %v3731_v14, 127  ;;  %v354_v54 = vld [vmem:[%s4156_s5] ss:$8 sm:$0x3] (!%p217_p9)  ;;  %s3600_s14 = smov (!%p217_p9), 48  }
  0x15   : > { %s4165_s9 = smov (!%p247_p10, %s3297_s9), 3  ;;  %v834_v45 = vrot.slane %v3312_v39, %v3735_v16  ;;  %vm921_vm5 = vcmp.lt.s32.totalorder %v3731_v14, 113  ;;  %v830_v56 = vrot.slane %v3312_v39, %v3733_v15  ;;  %v934_v57 = vrot.slane %v3315_v52, %v3735_v16  ;;  %v3318_v11 = vld [vmem:[%s4156_s5 + $0x7] ss:$8 sm:$0x3]  ;;  %s3602_s16 = smov 45  }
  0x16   : > { %s3298_s12 = sshll.u32 %s4165_s9, 3  ;;  %s3587_s9 = smov 112   ;;  %vm351_vm6 = vcmp.lt.s32.totalorder %v3731_v14, 17  ;;  %v359_v59 = vrot.slane %v354_v54, %v3733_v15  ;;  %v363_v60 = vrot.slane %v354_v54, %v3735_v16  ;;  %vm1021_vm7 = vcmp.lt.s32.totalorder %v3731_v14, 112 }
  0x17   : > { %s250_s15 = scalar_lea.vmem %s4151_s0, %s3298_s12  ;;  %vm1121_vm8 = vcmp.lt.s32.totalorder %v3731_v14, 111  ;;  %vm1306_vm9 = vcmp.lt.s32.totalorder %v3731_v14, 34  ;;  %vm1478_vm10 = vcmp.lt.s32.totalorder %v3731_v14, 32  ;;  %vm1578_vm11 = vcmp.lt.s32.totalorder %v3731_v14, 30  ;;  %s3603_s17 = smov 3  }
  0x18   : > { %v254_v3 = vld [vmem:[%s250_s15 + $0x8] sm:$0xff]  ;;  %v253_v4 = vld [vmem:[%s250_s15] sm:$0xff]  ;;  %s3590_s15 = smov 34   ;;  %vm1678_vm12 = vcmp.lt.s32.totalorder %v3731_v14, 2  ;;  %vm1778_vm13 = vcmp.lt.s32.totalorder %v3731_v14, 126  ;;  %vm1878_vm14 = vcmp.lt.s32.totalorder %v3731_v14, 98 }
  0x19   : > { %266 = vmatprep.subr.mxu0 %v254_v3  ;;  %vm1978_vm15 = vcmp.lt.s32.totalorder %v3731_v14, 96 }
  0x1a   : > { %267 = vmatpush1.msra.mxu0 %v253_v4 }
  0x1b   : > { %3299 = vmatmul.mubr.msk.f32.vlgmr.msra.gmra.mrb[0].mxu0 %vm262_vm0, %v255_v5 }
  0x1c   : > { %436 = vmatprep.mubr.f32.mxu0 %v3579_v1 }
  0x8e   : > { %v260_v6 = vpop.permute.xlu0 %259 }
  0xee   : > { %v332_v7 = vpop.f32.mrb[0].mxu0 }
  0xef   : > { %v3710_v8 = vadd.f32 %v332_v7, %v260_v6  ;;  %v334_v9 = vpop.f32.mrb[1].mxu0 }
  0xf0   : > { %v3712_v10 = vadd.f32 %v334_v9, %v260_v6 }
  0xf1   : > { %517 = vrot.lane.b32.xlu0 %v3710_v8, %s3581_s18 }
  0xf2   : > { %519 = vrot.lane.b32.xlu1 %v3712_v10, %s3581_s18  ;;  %s3591_s18 = smov 32  }
  0xf5   : > { %619 = vrot.lane.b32.xlu0 %v3712_v10, %s3582_s19 }
  0xf6   : > { %617 = vrot.lane.b32.xlu1 %v3710_v8, %s3582_s19  ;;  %s3592_s19 = smov 30  }
  0xf9   : > { %719 = vrot.lane.b32.xlu0 %v3712_v10, %s3583_s20 }
  0xfa   : > { %717 = vrot.lane.b32.xlu1 %v3710_v8, %s3583_s20  ;;  %s3593_s20 = smov 2  }
  0xfd   : > { %819 = vrot.lane.b32.xlu0 %v3712_v10, %s3584_s26 }
  0xfe   : > { %817 = vrot.lane.b32.xlu1 %v3710_v8, %s3584_s26  ;;  %s3594_s26 = smov 126  }
 0x101   : > { %919 = vrot.lane.b32.xlu0 %v3712_v10, %s3585_s28 }
 0x102   : > { %917 = vrot.lane.b32.xlu1 %v3710_v8, %s3585_s28  ;;  %s3595_s28 = smov 98  }
 0x105   : > { %347 = vrot.lane.b32.xlu0 %v3712_v10, %s3586_s29 }
 0x106   : > { %345 = vrot.lane.b32.xlu1 %v3710_v8, %s3586_s29  ;;  %s3596_s29 = smov 96  }
 0x109   : > { %1019 = vrot.lane.b32.xlu0 %v3712_v10, %s3587_s9 }
 0x10a   : > { %1017 = vrot.lane.b32.xlu1 %v3710_v8, %s3587_s9  ;;  %s3597_s9 = smov 94  }
 0x10d   : > { %1119 = vrot.lane.b32.xlu0 %v3712_v10, %s3588_s10 }
 0x10e   : > { %1117 = vrot.lane.b32.xlu1 %v3710_v8, %s3588_s10 }
 0x112   : > { %1218 = vperm.xlu1 %3511, %v3697_v0  }
 0x163   : > { %v518_v20 = vpop.permute.xlu0 %517 }
 0x164   : > { %v520_v22 = vpop.permute.xlu1 %519 }
 0x165   : > { %v523_v23 = vsel %vm521_vm1, %v520_v22, %v518_v20  ;;  %v522_v24 = vsel %vm521_vm1, %v518_v20, %v520_v22  ;;  %v1034_v20 = vrot.slane %v3318_v11, %v3735_v16  ;;  %v3313_v22 = vld [vmem:[%s4153_s2 + $0x28] sm:$0xff]  ;;  %vm2078_vm1 = vcmp.lt.s32.totalorder %v3731_v14, 94 }
 0x166   : > { %v538_v27 = vmul.f32 %v534_v18, %v522_v24  ;;  %v537_v28 = vmul.f32 %v530_v19, %v523_v23  ;;  %v930_v18 = vrot.slane %v3315_v52, %v3733_v15  ;;  %v3326_v52 = vld [vmem:[%s4156_s5 + $0x11] ss:$8 sm:$0x3] }
 0x167   : > { %v620_v29 = vpop.permute.xlu0 %619  ;;  %v1319_v54 = vrot.slane %v3326_v52, %v3735_v16 }
 0x168   : > { %v618_v32 = vpop.permute.xlu1 %617  ;;  %544 = vmatprep.subr.mxu1 %v538_v27 }
 0x169   : > { %v622_v33 = vsel %vm621_vm2, %v618_v32, %v620_v29  ;;  %v623_v34 = vsel %vm621_vm2, %v620_v29, %v618_v32  ;;  %545 = vmatpush1.msra.mxu1 %v537_v28  ;;  %v1030_v29 = vrot.slane %v3318_v11, %v3733_v15  ;;  %vm2264_vm2 = vcmp.lt.s32.totalorder %v3731_v14, 51 }
 0x16a   : > { %v637_v35 = vmul.f32 %v630_v25, %v623_v34  ;;  %v638_v36 = vmul.f32 %v634_v26, %v622_v33  ;;  %3305 = vmatmul.mubr.msk.f32.vlgmr.msra.gmra.mrb[0].mxu1 %vm262_vm0, %v3304_v30  ;;  %v3321_v25 = vld [vmem:[%s4156_s5 + $0x10] ss:$8 sm:$0x3]  ;;  %v3300_v26 = vld [vmem:[%s4153_s2 + $0x20] sm:$0xff] }
 0x16b   : > { %v720_v38 = vpop.permute.xlu0 %719  ;;  %708 = vmatprep.mubr.f32.mxu1 %v3579_v1  ;;  %v1134_v31 = vrot.slane %v3321_v25, %v3735_v16  ;;  %v3316_v33 = vld [vmem:[%s4153_s2 + $0x30] sm:$0xff] }
 0x16c   : > { %v718_v40 = vpop.permute.xlu1 %717  ;;  %644 = vmatprep.subr.mxu1 %v638_v36  ;;  %v1130_v36 = vrot.slane %v3321_v25, %v3733_v15 }
 0x16d   : > { %v722_v42 = vsel %vm721_vm3, %v718_v40, %v720_v38  ;;  %645 = vmatpush1.msra.mxu1 %v637_v35  ;;  %v723_v43 = vsel %vm721_vm3, %v720_v38, %v718_v40  ;;  %v3319_v38 = vld [vmem:[%s4153_s2 + $0x38] sm:$0xff]  ;;  %v3322_v40 = vld [vmem:[%s4153_s2 + $0x40] sm:$0xff]  ;;  %vm2436_vm3 = vcmp.lt.s32.totalorder %v3731_v14, 48 }
 0x16e   : > { %v738_v44 = vmul.f32 %v734_v37, %v722_v42  ;;  %v737_v49 = vmul.f32 %v730_v41, %v723_v43 }
 0x16f   : > { %v820_v46 = vpop.permute.xlu0 %819 }
 0x170   : > { %v818_v48 = vpop.permute.xlu1 %817  ;;  %744 = vmatprep.subr.mxu1 %v738_v44 }
 0x171   : > { %v823_v50 = vsel %vm821_vm4, %v820_v46, %v818_v48  ;;  %v822_v58 = vsel %vm821_vm4, %v818_v48, %v820_v46  ;;  %vm2536_vm4 = vcmp.lt.s32.totalorder %v3731_v14, 45 }
 0x172   : > { %v838_v51 = vmul.f32 %v834_v45, %v823_v50  ;;  %3308 = vmatmul.mubr.msk.f32.vlgmr.msra.gmra.mrb[0].mxu1 %vm262_vm0, %v3307_v47  ;;  %v837_v3 = vmul.f32 %v830_v56, %v822_v58  ;;  %v1223_v50 = vld [vmem:[%s4154_s3] sm:$0xff]  ;;  %v3330_v56 = vld [vmem:[%s4156_s5 + $0x12] ss:$8 sm:$0x3] }
 0x173   : > { %745 = vmatpush1.msra.mxu1 %v737_v49  ;;  %v920_v53 = vpop.permute.xlu0 %919  ;;  %808 = vmatprep.mubr.f32.mxu1 %v3579_v1  ;;  %v1487_v11 = vrot.slane %v3330_v56, %v3733_v15 }
 0x174   : > { %v918_v55 = vpop.permute.xlu1 %917  ;;  %844 = vmatprep.subr.mxu1 %v838_v51  ;;  %v3598_v51 = vmov 2  }
 0x175   : > { %v923_v61 = vsel %vm921_vm5, %v920_v53, %v918_v55  ;;  %v922_v19 = vsel %vm921_vm5, %v918_v55, %v920_v53  ;;  %3512 = vset.pattern.permute.xlu0 %v3598_v51  ;;  %v1315_v53 = vrot.slane %v3326_v52, %v3733_v15  ;;  %v3345_v51 = vld [vmem:[%s4156_s5 + $0x20] ss:$8 sm:$0x3]  ;;  %vm2636_vm5 = vcmp.lt.s32.totalorder %v3731_v14, 3 }
 0x176   : > { %v938_v6 = vmul.f32 %v934_v57, %v923_v61  ;;  %v937_v23 = vmul.f32 %v930_v18, %v922_v19  ;;  %v3325_v18 = vld [vmem:[%s4153_s2 + $0x68] sm:$0xff] }
 0x177   : > { %v348_v62 = vpop.permute.xlu0 %347 }
 0x178   : > { %v346_v2 = vpop.permute.xlu1 %345 }
 0x179   : > { %v352_v4 = vsel %vm351_vm6, %v346_v2, %v348_v62  ;;  %v353_v5 = vsel %vm351_vm6, %v348_v62, %v346_v2  ;;  %v1491_v62 = vrot.slane %v3330_v56, %v3735_v16  ;;  %v3327_v2 = vld [vmem:[%s4153_s2 + $0x48] sm:$0xff]  ;;  %v1991_v56 = vrot.slane %v3345_v51, %v3735_v16 }
 0x17a   : > { %v366_v7 = vmul.f32 %v359_v59, %v353_v5  ;;  %v367_v9 = vmul.f32 %v363_v60, %v352_v4  ;;  %3311 = vmatmul.mubr.msk.f32.vlgmr.msra.gmra.mrb[0].mxu1 %vm262_vm0, %v3310_v63  ;;  %vm2736_vm6 = vcmp.lt.s32.totalorder %v3731_v14, 125 }
 0x17b   : > { %845 = vmatpush1.msra.mxu1 %v837_v3  ;;  %908 = vmatprep.mubr.f32.mxu1 %v3579_v1  ;;  %v1020_v13 = vpop.permute.xlu0 %1019 }
 0x17c   : > { %944 = vmatprep.subr.mxu1 %v938_v6  ;;  %v1018_v17 = vpop.permute.xlu1 %1017  ;;  %372 = vmatprep.subr.mxu0 %v367_v9  ;;  %v3333_v6 = vld [vmem:[%s4156_s5 + $0x13] ss:$8 sm:$0x3] }
 0x17d   : > { %373 = vmatpush1.msra.mxu0 %v366_v7  ;;  %v1023_v21 = vsel %vm1021_vm7, %v1020_v13, %v1018_v17  ;;  %v1022_v30 = vsel %vm1021_vm7, %v1018_v17, %v1020_v13  ;;  %v1591_v13 = vrot.slane %v3333_v6, %v3735_v16  ;;  %vm2836_vm7 = vcmp.lt.s32.totalorder %v3731_v14, 83 }
 0x17e   : > { %446 = vmatprep.subr.mxu0 %v3712_v10  ;;  %3301 = vmatmul.mubr.msk.f32.vlgmr.msra.gmra.mrb[2].mxu0 %vm262_vm0, %v368_v12  ;;  %v1038_v24 = vmul.f32 %v1034_v20, %v1023_v21  ;;  %v1037_v34 = vmul.f32 %v1030_v29, %v1022_v30  ;;  %v3336_v21 = vld [vmem:[%s4156_s5 + $0x14] ss:$8 sm:$0x3] }
 0x17f   : > { %447 = vmatpush1.msra.mxu0 %v3710_v8  ;;  %510 = vmatprep.mubr.f32.mxu0 %v3579_v1  ;;  %v1120_v27 = vpop.permute.xlu0 %1119 }
 0x180   : > { %v1118_v28 = vpop.permute.xlu1 %1117 }
 0x181   : > { %v1123_v32 = vsel %vm1121_vm8, %v1120_v27, %v1118_v28  ;;  %v1122_v37 = vsel %vm1121_vm8, %v1118_v28, %v1120_v27  ;;  %v3331_v28 = vld [vmem:[%s4153_s2 + $0x50] sm:$0xff]  ;;  %vm2936_vm8 = vcmp.lt.s32.totalorder %v3731_v14, 80 }
 0x182   : > { %3314 = vmatmul.mubr.msk.f32.vlgmr.msra.gmra.mrb[0].mxu1 %vm262_vm0, %v3313_v22  ;;  %v1138_v35 = vmul.f32 %v1134_v31, %v1123_v32  ;;  %v1137_v39 = vmul.f32 %v1130_v36, %v1122_v37  ;;  %v3339_v31 = vld [vmem:[%s4156_s5 + $0x16] ss:$8 sm:$0x3] }
 0x183   : > { %945 = vmatpush1.msra.mxu1 %v937_v23  ;;  %1008 = vmatprep.mubr.f32.mxu1 %v3579_v1  ;;  %v1791_v36 = vrot.slane %v3339_v31, %v3735_v16 }
 0x184   : > { %1044 = vmatprep.subr.mxu1 %v1038_v24  ;;  %v1587_v24 = vrot.slane %v3333_v6, %v3733_v15  ;;  %v3343_v6 = vld [vmem:[%s4153_s2 + $0x78] sm:$0xff] }
 0x186   : > { %3302 = vmatmul.mubr.msk.f32.vlgmr.msra.gmra.mrb[2].mxu0 %vm262_vm0, %v3300_v26  ;;  %v1691_v26 = vrot.slane %v3336_v21, %v3735_v16 }
 0x187   : > { %1291 = vmatprep.mubr.f32.mxu0 %v3579_v1 }
 0x18a   : > { %3317 = vmatmul.mubr.msk.f32.vlgmr.msra.gmra.mrb[0].mxu1 %vm262_vm0, %v3316_v33 }
 0x18b   : > { %1045 = vmatpush1.msra.mxu1 %v1037_v34  ;;  %1108 = vmatprep.mubr.f32.mxu1 %v3579_v1  ;;  %v1687_v34 = vrot.slane %v3336_v21, %v3733_v15 }
 0x18c   : > { %1144 = vmatprep.subr.mxu1 %v1138_v35 }
 0x191   : > { %v1219_v44 = vpop.permute.xlu1 %1218 }
 0x192   : > { %3320 = vmatmul.mubr.msk.f32.vlgmr.msra.gmra.mrb[0].mxu1 %vm262_vm0, %v3319_v38  ;;  %v3334_v38 = vld [vmem:[%s4153_s2 + $0x58] sm:$0xff] }
 0x193   : > { %1145 = vmatpush1.msra.mxu1 %v1137_v39  ;;  %1208 = vmatprep.mubr.f32.mxu1 %v3579_v1 }
 0x19a   : > { %3323 = vmatmul.mubr.msk.f32.vlgmr.msra.gmra.mrb[0].mxu1 %vm262_vm0, %v3322_v40 }
 0x19b   : > { %2351 = vmatprep.mubr.f32.mxu1 %v3579_v1 }
 0x259   : > { %v512_v41 = vpop.f32.mrb[2].mxu0 }
 0x25a   : > { %v514_v42 = vpop.f32.mrb[3].mxu0 }
 0x26d   : > { %v1210_v43 = vpop.f32.mrb[0].mxu1 }
 0x26e   : > { %v3387_v45 = vadd.f32 %v1210_v43, %v512_v41  ;;  %v1212_v46 = vpop.f32.mrb[1].mxu1  ;;  %v3342_v41 = vld [vmem:[%s4156_s5 + $0x17] ss:$8 sm:$0x3] }
 0x26f   : > { %v3388_v47 = vadd.f32 %v1212_v46, %v514_v42  ;;  %v1891_v46 = vrot.slane %v3342_v41, %v3735_v16 }
 0x270   : > { %v1221_v48 = vadd.f32 %v3387_v45, %v1219_v44 }
 0x271   : > { %v1222_v49 = vadd.f32 %v3388_v47, %v1219_v44  ;;  %v1787_v44 = vrot.slane %v3339_v31, %v3733_v15  ;;  %v3358_v31 = vld [vmem:[%s4156_s5 + $0x23] ss:$8 sm:$0x3] }
 0x272   : > { %1302 = vrot.lane.b32.xlu0 %v1221_v48, %s3590_s15 }
 0x273   : > { %1304 = vrot.lane.b32.xlu1 %v1222_v49, %s3590_s15  ;;  %1227 = vmatprep.subr.mxu0 %v1222_v49  ;;  %s3601_s15 = smov 51  }
 0x274   : > { %1228 = vmatpush1.msra.mxu0 %v1221_v48 }
 0x275   : > { %3324 = vmatmul.mubr.msk.f32.vlgmr.msra.gmra.mrb[4].mxu0 %vm262_vm0, %v1223_v50 }
 0x276   : > { %1474 = vrot.lane.b32.xlu0 %v1221_v48, %s3591_s18  ;;  %1393 = vmatprep.mubr.f32.mxu0 %v3579_v1 }
 0x277   : > { %1476 = vrot.lane.b32.xlu1 %v1222_v49, %s3591_s18  ;;  %s3604_s18 = smov 125  }
 0x27a   : > { %1574 = vrot.lane.b32.xlu0 %v1221_v48, %s3592_s19 }
 0x27b   : > { %1576 = vrot.lane.b32.xlu1 %v1222_v49, %s3592_s19  ;;  %s3605_s19 = smov 83  }
 0x27e   : > { %1674 = vrot.lane.b32.xlu0 %v1221_v48, %s3593_s20 }
 0x27f   : > { %1676 = vrot.lane.b32.xlu1 %v1222_v49, %s3593_s20  ;;  %s3606_s20 = smov 80  }
 0x282   : > { %1774 = vrot.lane.b32.xlu0 %v1221_v48, %s3594_s26 }
 0x283   : > { %1776 = vrot.lane.b32.xlu1 %v1222_v49, %s3594_s26  ;;  %s3607_s26 = smov 77  }
 0x286   : > { %1874 = vrot.lane.b32.xlu0 %v1221_v48, %s3595_s28 }
 0x287   : > { %1876 = vrot.lane.b32.xlu1 %v1222_v49, %s3595_s28 }
 0x28a   : > { %1974 = vrot.lane.b32.xlu0 %v1221_v48, %s3596_s29 }
 0x28b   : > { %1976 = vrot.lane.b32.xlu1 %v1222_v49, %s3596_s29 }
 0x28e   : > { %2074 = vrot.lane.b32.xlu0 %v1221_v48, %s3597_s9 }
 0x28f   : > { %2076 = vrot.lane.b32.xlu1 %v1222_v49, %s3597_s9  ;;  %s3609_s9 = smov [#allocation2]  }
 0x290   : > { %s3519_s10 = sshll.u32 %s3609_s9, 4  ;;  %s3520_s10 = int_to_ptr.vmem [resolvable:$false] %s3519_s10 }
 0x291   : > { %s3521_s11 = scalar_lea.vmem %s3520_s10, 512 }
 0x292   : > { %2175 = vperm.xlu0 %3512, %v3697_v0  }
 0x2e4   : > { %v1303_v55 = vpop.permute.xlu0 %1302 }
 0x2e5   : > { %v1305_v57 = vpop.permute.xlu1 %1304 }
 0x2e6   : > { %v1307_v58 = vsel %vm1306_vm9, %v1303_v55, %v1305_v57  ;;  %v1308_v59 = vsel %vm1306_vm9, %v1305_v57, %v1303_v55  ;;  %vm3036_vm9 = vcmp.lt.s32.totalorder %v3731_v14, 77 }
 0x2e7   : > { %v1322_v60 = vmul.f32 %v1315_v53, %v1308_v59  ;;  %v1323_v61 = vmul.f32 %v1319_v54, %v1307_v58  ;;  %v1887_v54 = vrot.slane %v3342_v41, %v3733_v15  ;;  %v3340_v58 = vld [vmem:[%s4153_s2 + $0x70] sm:$0xff] }
 0x2e8   : > { %v1475_v63 = vpop.permute.xlu0 %1474 }
 0x2e9   : > { %v1477_v3 = vpop.permute.xlu1 %1476  ;;  %1329 = vmatprep.subr.mxu0 %v1323_v61  ;;  %v3348_v61 = vld [vmem:[%s4156_s5 + $0x21] ss:$8 sm:$0x3] }
 0x2ea   : > { %v1479_v4 = vsel %vm1478_vm10, %v1475_v63, %v1477_v3  ;;  %1330 = vmatpush1.msra.mxu0 %v1322_v60  ;;  %v1480_v12 = vsel %vm1478_vm10, %v1477_v3, %v1475_v63 }
 0x2eb   : > { %v1495_v5 = vmul.f32 %v1491_v62, %v1479_v4  ;;  %3328 = vmatmul.mubr.msk.f32.vlgmr.msra.gmra.mrb[6].mxu0 %vm262_vm0, %v3327_v2  ;;  %1403 = vmatprep.subr.mxu0 %v1222_v49  ;;  %v1494_v19 = vmul.f32 %v1487_v11, %v1480_v12  ;;  %v1987_v2 = vrot.slane %v3345_v51, %v3733_v15 }
 0x2ec   : > { %1404 = vmatpush1.msra.mxu0 %v1221_v48  ;;  %1467 = vmatprep.mubr.f32.mxu0 %v3579_v1  ;;  %v1575_v7 = vpop.permute.xlu0 %1574  ;;  %v3337_v48 = vld [vmem:[%s4153_s2 + $0x60] sm:$0xff]  ;;  %v2091_v4 = vrot.slane %v3348_v61, %v3735_v16  ;;  %v2087_v11 = vrot.slane %v3348_v61, %v3733_v15 }
 0x2ed   : > { %v1577_v9 = vpop.permute.xlu1 %1576  ;;  %1501 = vmatprep.subr.mxu0 %v1495_v5 }
 0x2ee   : > { %v1579_v17 = vsel %vm1578_vm11, %v1575_v7, %v1577_v9  ;;  %v1580_v25 = vsel %vm1578_vm11, %v1577_v9, %v1575_v7 }
 0x2ef   : > { %v1595_v20 = vmul.f32 %v1591_v13, %v1579_v17  ;;  %v1594_v29 = vmul.f32 %v1587_v24, %v1580_v25  ;;  %v3346_v13 = vld [vmem:[%s4153_s2 + $0x80] sm:$0xff]  ;;  %v3351_v25 = vld [vmem:[%s4154_s3 + $0x8] sm:$0xff] }
 0x2f0   : > { %v1675_v22 = vpop.permute.xlu0 %1674 }
 0x2f1   : > { %v1677_v23 = vpop.permute.xlu1 %1676 }
 0x2f2   : > { %v1679_v27 = vsel %vm1678_vm12, %v1675_v22, %v1677_v23  ;;  %v1680_v35 = vsel %vm1678_vm12, %v1677_v23, %v1675_v22 }
 0x2f3   : > { %3329 = vmatmul.mubr.msk.f32.vlgmr.msra.gmra.mrb[6].mxu0 %vm262_vm0, %v3325_v18  ;;  %v1695_v30 = vmul.f32 %v1691_v26, %v1679_v27  ;;  %v1694_v39 = vmul.f32 %v1687_v34, %v1680_v35  ;;  %v3349_v18 = vld [vmem:[%s4153_s2 + $0x88] sm:$0xff]  ;;  %v3608_v26 = vmov 3  }
 0x2f4   : > { %1502 = vmatpush1.msra.mxu0 %v1494_v19  ;;  %1565 = vmatprep.mubr.f32.mxu0 %v3579_v1  ;;  %v1775_v32 = vpop.permute.xlu0 %1774  ;;  %v3599_v19 = vmov 4   ;;  %v3354_v27 = vld [vmem:[%s4156_s5 + $0x22] ss:$8 sm:$0x3] }
 0x2f5   : > { %1601 = vmatprep.subr.mxu0 %v1595_v20  ;;  %v1777_v33 = vpop.permute.xlu1 %1776  ;;  %3514 = vset.pattern.permute.xlu1 %v3599_v19 }
 0x2f6   : > { %v1780_v37 = vsel %vm1778_vm13, %v1777_v33, %v1775_v32  ;;  %v1779_v45 = vsel %vm1778_vm13, %v1775_v32, %v1777_v33  ;;  %3513 = vset.pattern.permute.xlu0 %v3608_v26 }
 0x2f7   : > { %v1795_v40 = vmul.f32 %v1791_v36, %v1780_v37  ;;  %v1794_v49 = vmul.f32 %v1787_v44, %v1779_v45  ;;  %v2449_v36 = vrot.slane %v3358_v31, %v3735_v16  ;;  %v3355_v37 = vld [vmem:[%s4153_s2 + $0x90] sm:$0xff]  ;;  %v2445_v44 = vrot.slane %v3358_v31, %v3733_v15 }
 0x2f8   : > { %v1875_v42 = vpop.permute.xlu0 %1874 }
 0x2f9   : > { %v1877_v43 = vpop.permute.xlu1 %1876 }
 0x2fa   : > { %v1880_v47 = vsel %vm1878_vm14, %v1877_v43, %v1875_v42  ;;  %v1879_v55 = vsel %vm1878_vm14, %v1875_v42, %v1877_v43  ;;  %v3361_v42 = vld [vmem:[%s4156_s5 + $0x24] ss:$8 sm:$0x3] }
 0x2fb   : > { %3332 = vmatmul.mubr.msk.f32.vlgmr.msra.gmra.mrb[6].mxu0 %vm262_vm0, %v3331_v28  ;;  %v1895_v50 = vmul.f32 %v1891_v46, %v1880_v47  ;;  %v1894_v59 = vmul.f32 %v1887_v54, %v1879_v55  ;;  %v2549_v47 = vrot.slane %v3361_v42, %v3735_v16  ;;  %v2545_v54 = vrot.slane %v3361_v42, %v3733_v15 }
 0x2fc   : > { %1602 = vmatpush1.msra.mxu0 %v1594_v29  ;;  %1665 = vmatprep.mubr.f32.mxu0 %v3579_v1  ;;  %v1975_v52 = vpop.permute.xlu0 %1974  ;;  %v2273_v29 = vrot.slane %v3354_v27, %v3733_v15 }
 0x2fd   : > { %1701 = vmatprep.subr.mxu0 %v1695_v30  ;;  %v1977_v53 = vpop.permute.xlu1 %1976  ;;  %v2277_v30 = vrot.slane %v3354_v27, %v3735_v16 }
 0x2fe   : > { %v1980_v57 = vsel %vm1978_vm15, %v1977_v53, %v1975_v52  ;;  %v1979_v3 = vsel %vm1978_vm15, %v1975_v52, %v1977_v53  ;;  %v3364_v52 = vld [vmem:[%s4156_s5 + $0x25] ss:$8 sm:$0x3] }
 0x2ff   : > { %v1995_v60 = vmul.f32 %v1991_v56, %v1980_v57  ;;  %v1994_v7 = vmul.f32 %v1987_v2, %v1979_v3  ;;  %v2649_v57 = vrot.slane %v3364_v52, %v3735_v16  ;;  %v2645_v2 = vrot.slane %v3364_v52, %v3733_v15 }
 0x300   : > { %v2075_v62 = vpop.permute.xlu0 %2074 }
 0x301   : > { %v2077_v63 = vpop.permute.xlu1 %2076 }
 0x302   : > { %v2080_v5 = vsel %vm2078_vm1, %v2077_v63, %v2075_v62  ;;  %v2079_v12 = vsel %vm2078_vm1, %v2075_v62, %v2077_v63  ;;  %v3367_v62 = vld [vmem:[%s4156_s5 + $0x27] ss:$8 sm:$0x3] }
 0x303   : > { %3335 = vmatmul.mubr.msk.f32.vlgmr.msra.gmra.mrb[6].mxu0 %vm262_vm0, %v3334_v38  ;;  %v2095_v9 = vmul.f32 %v2091_v4, %v2080_v5  ;;  %v2094_v17 = vmul.f32 %v2087_v11, %v2079_v12  ;;  %v2749_v5 = vrot.slane %v3367_v62, %v3735_v16  ;;  %v3370_v12 = vld [vmem:[%s4156_s5 + $0x30] ss:$8 sm:$0x3] }
 0x304   : > { %1702 = vmatpush1.msra.mxu0 %v1694_v39  ;;  %1765 = vmatprep.mubr.f32.mxu0 %v3579_v1  ;;  %v2845_v27 = vrot.slane %v3370_v12, %v3733_v15 }
 0x305   : > { %1801 = vmatprep.subr.mxu0 %v1795_v40 }
 0x30b   : > { %3338 = vmatmul.mubr.msk.f32.vlgmr.msra.gmra.mrb[6].mxu0 %vm262_vm0, %v3337_v48 }
 0x30c   : > { %1802 = vmatpush1.msra.mxu0 %v1794_v49  ;;  %1865 = vmatprep.mubr.f32.mxu0 %v3579_v1  ;;  %v3353_v49 = vld [vmem:[%s4153_s2 + $0xb0] sm:$0xff] }
 0x30d   : > { %1901 = vmatprep.subr.mxu0 %v1895_v50 }
 0x311   : > { %v2176_v20 = vpop.permute.xlu0 %2175 }
 0x313   : > { %3341 = vmatmul.mubr.msk.f32.vlgmr.msra.gmra.mrb[6].mxu0 %vm262_vm0, %v3340_v58 }
 0x314   : > { %1902 = vmatpush1.msra.mxu0 %v1894_v59  ;;  %1965 = vmatprep.mubr.f32.mxu0 %v3579_v1  ;;  %v3359_v59 = vld [vmem:[%s4153_s2 + $0x98] sm:$0xff] }
 0x315   : > { %2001 = vmatprep.subr.mxu0 %v1995_v60 }
 0x31b   : > { %3344 = vmatmul.mubr.msk.f32.vlgmr.msra.gmra.mrb[6].mxu0 %vm262_vm0, %v3343_v6 }
 0x31c   : > { %2002 = vmatpush1.msra.mxu0 %v1994_v7  ;;  %2065 = vmatprep.mubr.f32.mxu0 %v3579_v1  ;;  %v3362_v7 = vld [vmem:[%s4153_s2 + $0xa0] sm:$0xff] }
 0x31d   : > { %2101 = vmatprep.subr.mxu0 %v2095_v9 }
 0x323   : > { %3347 = vmatmul.mubr.msk.f32.vlgmr.msra.gmra.mrb[6].mxu0 %vm262_vm0, %v3346_v13 }
 0x324   : > { %2102 = vmatpush1.msra.mxu0 %v2094_v17  ;;  %2165 = vmatprep.mubr.f32.mxu0 %v3579_v1  ;;  %v2745_v17 = vrot.slane %v3367_v62, %v3733_v15 }
 0x32b   : > { %3350 = vmatmul.mubr.msk.f32.vlgmr.msra.gmra.mrb[6].mxu0 %vm262_vm0, %v3349_v18 }
 0x32c   : > { %2249 = vmatprep.mubr.f32.mxu0 %v3579_v1 }
 0x3fe   : > { %v2167_v21 = vpop.f32.mrb[6].mxu0 }
 0x3ff   : > { %v2178_v22 = vadd.f32 %v2176_v20, %v2167_v21  ;;  %v2169_v23 = vpop.f32.mrb[7].mxu0 }
 0x400   : > { %v2179_v24 = vadd.f32 %v2176_v20, %v2169_v23  ;;  %v2849_v20 = vrot.slane %v3370_v12, %v3735_v16 }
 0x401   : > { %2432 = vrot.lane.b32.xlu0 %v2178_v22, %s3600_s14  ;;  %2260 = vrot.lane.b32.xlu1 %v2178_v22, %s3601_s15 }
 0x402   : > { %2185 = vmatprep.subr.mxu0 %v2179_v24 }
 0x403   : > { %2186 = vmatpush1.msra.mxu0 %v2178_v22 }
 0x404   : > { %3352 = vmatmul.mubr.msk.f32.vlgmr.msra.gmra.mrb[4].mxu0 %vm262_vm0, %v3351_v25  ;;  %v3373_v25 = vld [vmem:[%s4156_s5 + $0x31] ss:$8 sm:$0x3] }
 0x405   : > { %2532 = vrot.lane.b32.xlu0 %v2178_v22, %s3602_s16  ;;  %2262 = vrot.lane.b32.xlu1 %v2179_v24, %s3601_s15  ;;  %s243_s15 = sand.u32 1, %s3569_s22  }
 0x406   : > { %3207 = vmatprep.mubr.f32.mxu0 %v3579_v1 }
 0x409   : > { %2632 = vrot.lane.b32.xlu0 %v2178_v22, %s3603_s17  ;;  %2434 = vrot.lane.b32.xlu1 %v2179_v24, %s3600_s14 }
 0x40d   : > { %2732 = vrot.lane.b32.xlu0 %v2178_v22, %s3604_s18  ;;  %2534 = vrot.lane.b32.xlu1 %v2179_v24, %s3602_s16  ;;  %s3296_s16 = sshll.u32 %s243_s15, 4 }
 0x411   : > { %2832 = vrot.lane.b32.xlu0 %v2178_v22, %s3605_s19  ;;  %2634 = vrot.lane.b32.xlu1 %v2179_v24, %s3603_s17  ;;  %s3386_s17 = sshll.u32 %s3666_s25, 8  ;;  %s3219_s25 = scalar_lea.sflag [#allocation3], %s243_s15 }
 0x412   : > { %s4109_s28 = scalar_lea.hbm %s4157_s6, %s3386_s17 }
 0x415   : > { %2932 = vrot.lane.b32.xlu0 %v2178_v22, %s3606_s20  ;;  %2734 = vrot.lane.b32.xlu1 %v2179_v24, %s3604_s18  ;;  %s245_s18 = scalar_lea.vmem [#allocation2], %s3296_s16 }
 0x419   : > { %3032 = vrot.lane.b32.xlu0 %v2178_v22, %s3607_s26  ;;  %2834 = vrot.lane.b32.xlu1 %v2179_v24, %s3605_s19  ;;  %s3233_s19 = sshll.u32 %s245_s18, 4  ;;  %s4111_s19 = int_to_ptr.vmem [resolvable:$true] %s3233_s19 }
 0x41a   : > { %s3515_s29 = scalar_lea.vmem %s4111_s19, 256  ;;  %p3522_p0 = scmp.lt.s32.totalorder %s4111_s19, %s3520_s10 }
 0x41b   : > { %p3516_p11 = scmp.ne.s32.totalorder %s4111_s19, %s3515_s29  ;;  %p3523_p1 = scmp.lt.s32.totalorder %s3521_s11, %s3515_s29 }
 0x41d   : > { %2934 = vrot.lane.b32.xlu1 %v2179_v24, %s3606_s20  ;;  %3133 = vperm.xlu0 %3513, %v3697_v0   ;;  %p3517_p12 = pnand %p3516_p11, %p3683_p5  ;;  %p3524_p2 = por %p3523_p1, %p3522_p0 }
 0x41f   : > { %p3518_p13 = pneg %p3517_p12 }
 0x421   : > { %3034 = vrot.lane.b32.xlu1 %v2179_v24, %s3607_s26  ;;  %p3525_p3 = pnand %p3524_p2, %p3518_p13 }
 0x425   : > { %338 = vperm.xlu1 %3514, %v3697_v0  }
 0x473   : > { %v2261_v28 = vpop.permute.xlu1 %2260  ;;  %v2433_v38 = vpop.permute.xlu0 %2432 }
 0x477   : > { %v2263_v32 = vpop.permute.xlu1 %2262  ;;  %v2533_v45 = vpop.permute.xlu0 %2532 }
 0x478   : > { %v2265_v33 = vsel %vm2264_vm2, %v2261_v28, %v2263_v32  ;;  %v2266_v0 = vsel %vm2264_vm2, %v2263_v32, %v2261_v28  ;;  %v3368_v32 = vld [vmem:[%s4153_s2 + $0xb8] sm:$0xff] }
 0x479   : > { %v2280_v34 = vmul.f32 %v2273_v29, %v2266_v0  ;;  %v2281_v35 = vmul.f32 %v2277_v30, %v2265_v33  ;;  %v2949_v30 = vrot.slane %v3373_v25, %v3735_v16 }
 0x47b   : > { %2287 = vmatprep.subr.mxu1 %v2281_v35  ;;  %v2435_v39 = vpop.permute.xlu1 %2434  ;;  %v2633_v55 = vpop.permute.xlu0 %2632 }
 0x47c   : > { %v2437_v40 = vsel %vm2436_vm3, %v2433_v38, %v2435_v39  ;;  %2288 = vmatpush1.msra.mxu1 %v2280_v34  ;;  %v2438_v46 = vsel %vm2436_vm3, %v2435_v39, %v2433_v38  ;;  %v3376_v34 = vld [vmem:[%s4156_s5 + $0x32] ss:$8 sm:$0x3] }
 0x47d   : > { %v2453_v41 = vmul.f32 %v2449_v36, %v2437_v40  ;;  %3356 = vmatmul.mubr.msk.f32.vlgmr.msra.gmra.mrb[2].mxu1 %vm262_vm0, %v3355_v37  ;;  %2361 = vmatprep.subr.mxu1 %v2179_v24  ;;  %v2452_v50 = vmul.f32 %v2445_v44, %v2438_v46  ;;  %v2945_v36 = vrot.slane %v3373_v25, %v3733_v15 }
 0x47e   : > { %2362 = vmatpush1.msra.mxu1 %v2178_v22  ;;  %2425 = vmatprep.mubr.f32.mxu1 %v3579_v1  ;;  %v3365_v22 = vld [vmem:[%s4153_s2 + $0xa8] sm:$0xff]  ;;  %v3049_v39 = vrot.slane %v3376_v34, %v3735_v16  ;;  %v3045_v44 = vrot.slane %v3376_v34, %v3733_v15 }
 0x47f   : > { %2459 = vmatprep.subr.mxu1 %v2453_v41  ;;  %v2535_v43 = vpop.permute.xlu1 %2534  ;;  %v2733_v3 = vpop.permute.xlu0 %2732  ;;  %v3371_v41 = vld [vmem:[%s4153_s2 + $0xc0] sm:$0xff] }
 0x480   : > { %v2537_v48 = vsel %vm2536_vm4, %v2533_v45, %v2535_v43  ;;  %v2538_v56 = vsel %vm2536_vm4, %v2535_v43, %v2533_v45  ;;  %v3374_v45 = vld [vmem:[%s4153_s2 + $0xc8] sm:$0xff] }
 0x481   : > { %v2553_v51 = vmul.f32 %v2549_v47, %v2537_v48  ;;  %v2552_v60 = vmul.f32 %v2545_v54, %v2538_v56  ;;  %v3377_v47 = vld [vmem:[%s4153_s2 + $0xd0] sm:$0xff] }
 0x483   : > { %v2635_v53 = vpop.permute.xlu1 %2634  ;;  %v2833_v18 = vpop.permute.xlu0 %2832 }
 0x484   : > { %v2637_v58 = vsel %vm2636_vm5, %v2633_v55, %v2635_v53  ;;  %v2638_v4 = vsel %vm2636_vm5, %v2635_v53, %v2633_v55 }
 0x485   : > { %3357 = vmatmul.mubr.msk.f32.vlgmr.msra.gmra.mrb[2].mxu1 %vm262_vm0, %v3353_v49  ;;  %v2653_v61 = vmul.f32 %v2649_v57, %v2637_v58  ;;  %v2652_v9 = vmul.f32 %v2645_v2, %v2638_v4 }
 0x486   : > { %2460 = vmatpush1.msra.mxu1 %v2452_v50  ;;  %2523 = vmatprep.mubr.f32.mxu1 %v3579_v1 }
 0x487   : > { %2559 = vmatprep.subr.mxu1 %v2553_v51  ;;  %v2735_v63 = vpop.permute.xlu1 %2734  ;;  %v2933_v28 = vpop.permute.xlu0 %2932  ;;  %v3379_v51 = vld [vmem:[%s4154_s3 + $0x10] sm:$0xff] }
 0x488   : > { %v2738_v6 = vsel %vm2736_vm6, %v2735_v63, %v2733_v3  ;;  %v2737_v19 = vsel %vm2736_vm6, %v2733_v3, %v2735_v63 }
 0x489   : > { %v2753_v11 = vmul.f32 %v2749_v5, %v2738_v6  ;;  %v2752_v23 = vmul.f32 %v2745_v17, %v2737_v19 }
 0x48b   : > { %v2835_v13 = vpop.permute.xlu1 %2834  ;;  %v3033_v37 = vpop.permute.xlu0 %3032 }
 0x48c   : > { %v2838_v21 = vsel %vm2836_vm7, %v2835_v13, %v2833_v18  ;;  %v2837_v29 = vsel %vm2836_vm7, %v2833_v18, %v2835_v13 }
 0x48d   : > { %3360 = vmatmul.mubr.msk.f32.vlgmr.msra.gmra.mrb[2].mxu1 %vm262_vm0, %v3359_v59  ;;  %v2853_v24 = vmul.f32 %v2849_v20, %v2838_v21  ;;  %v2852_v33 = vmul.f32 %v2845_v27, %v2837_v29 }
 0x48e   : > { %2560 = vmatpush1.msra.mxu1 %v2552_v60  ;;  %2623 = vmatprep.mubr.f32.mxu1 %v3579_v1 }
 0x48f   : > { %2659 = vmatprep.subr.mxu1 %v2653_v61  ;;  %v2935_v26 = vpop.permute.xlu1 %2934 }
 0x490   : > { %v2938_v31 = vsel %vm2936_vm8, %v2935_v26, %v2933_v28  ;;  %v2937_v38 = vsel %vm2936_vm8, %v2933_v28, %v2935_v26 }
 0x491   : > { %v2953_v0 = vmul.f32 %v2949_v30, %v2938_v31  ;;  %v2952_v42 = vmul.f32 %v2945_v36, %v2937_v38 }
 0x493   : > { %v3035_v35 = vpop.permute.xlu1 %3034 }
 0x494   : > { %v3038_v40 = vsel %vm3036_vm9, %v3035_v35, %v3033_v37  ;;  %v3037_v16 = vsel %vm3036_vm9, %v3033_v37, %v3035_v35 }
 0x495   : > { %3363 = vmatmul.mubr.msk.f32.vlgmr.msra.gmra.mrb[2].mxu1 %vm262_vm0, %v3362_v7  ;;  %v3053_v43 = vmul.f32 %v3049_v39, %v3038_v40  ;;  %v3052_v46 = vmul.f32 %v3045_v44, %v3037_v16 }
 0x496   : > { %2660 = vmatpush1.msra.mxu1 %v2652_v9  ;;  %2723 = vmatprep.mubr.f32.mxu1 %v3579_v1 }
 0x497   : > { %2759 = vmatprep.subr.mxu1 %v2753_v11 }
 0x49c   : > { %v3134_v14 = vpop.permute.xlu0 %3133 }
 0x49d   : > { %3366 = vmatmul.mubr.msk.f32.vlgmr.msra.gmra.mrb[2].mxu1 %vm262_vm0, %v3365_v22 }
 0x49e   : > { %2760 = vmatpush1.msra.mxu1 %v2752_v23  ;;  %2823 = vmatprep.mubr.f32.mxu1 %v3579_v1 }
 0x49f   : > { %2859 = vmatprep.subr.mxu1 %v2853_v24 }
 0x4a5   : > { %3369 = vmatmul.mubr.msk.f32.vlgmr.msra.gmra.mrb[2].mxu1 %vm262_vm0, %v3368_v32 }
 0x4a6   : > { %2860 = vmatpush1.msra.mxu1 %v2852_v33  ;;  %2923 = vmatprep.mubr.f32.mxu1 %v3579_v1 }
 0x4a7   : > { %2959 = vmatprep.subr.mxu1 %v2953_v0 }
 0x4ad   : > { %3372 = vmatmul.mubr.msk.f32.vlgmr.msra.gmra.mrb[2].mxu1 %vm262_vm0, %v3371_v41 }
 0x4ae   : > { %2960 = vmatpush1.msra.mxu1 %v2952_v42  ;;  %3023 = vmatprep.mubr.f32.mxu1 %v3579_v1 }
 0x4af   : > { %3059 = vmatprep.subr.mxu1 %v3053_v43 }
 0x4b5   : > { %3375 = vmatmul.mubr.msk.f32.vlgmr.msra.gmra.mrb[2].mxu1 %vm262_vm0, %v3374_v45 }
 0x4b6   : > { %3060 = vmatpush1.msra.mxu1 %v3052_v46  ;;  %3123 = vmatprep.mubr.f32.mxu1 %v3579_v1  ;;  %v339_v1 = vpop.permute.xlu1 %338 }
 0x4b7   : > { %v341_v52 = vadd.f32 %v339_v1, %v3710_v8  ;;  %v342_v53 = vadd.f32 %v339_v1, %v3712_v10 }
 0x4bd   : > { %3378 = vmatmul.mubr.msk.f32.vlgmr.msra.gmra.mrb[2].mxu1 %vm262_vm0, %v3377_v47 }
 0x590   : > { %v3125_v15 = vpop.f32.mrb[2].mxu1 }
 0x591   : > { %v3127_v48 = vpop.f32.mrb[3].mxu1  ;;  %v3136_v50 = vadd.f32 %v3134_v14, %v3125_v15 }
 0x592   : > { %v3137_v49 = vadd.f32 %v3134_v14, %v3127_v48 }
 0x594   : > { %3143 = vmatprep.subr.mxu0 %v3137_v49 }
 0x595   : > { %3144 = vmatpush1.msra.mxu0 %v3136_v50 }
 0x596   : > { %3380 = vmatmul.mubr.msk.f32.vlgmr.msra.gmra.mrb[4].mxu0 %vm262_vm0, %v3379_v51 }
 0x669   : > { %v3209_v54 = vpop.f32.mrb[4].mxu0 }
 0x66a   : > { %v3389_v55 = vadd.f32 %v3209_v54, %v341_v52  ;;  %v3211_v56 = vpop.f32.mrb[5].mxu0 }
 0x66b   : > { %v3390_v57 = vadd.f32 %v3211_v56, %v342_v53 }
 0x66c   : > { %3216 = vst [vmem:[%s245_s18] sm:$0xff] %v3389_v55 }
 0x66d   : > { %3217 = vst [vmem:[%s245_s18 + $0x8] sm:$0xff] %v3390_v57 }
 0x66e   : > { %3528 = shalt.err (!%p3525_p3)
}
 0x66f   : > { %s3529_s12 = scalar_lea.hbm %s4109_s28, 256  ;;  %s3533_s15 = scalar_lea.hbm %s4157_s6, 512 }
 0x670   : > { %p3530_p4 = scmp.ne.s32.totalorder %s4109_s28, %s3529_s12  ;;  %p3534_p9 = scmp.lt.u32.totalorder %s4109_s28, %s4157_s6 }
 0x671   : > { %p3535_p10 = scmp.lt.u32.totalorder %s3533_s15, %s3529_s12  ;;  %p3537_p12 = scmp.lt.u32.totalorder %s3529_s12, %s4109_s28 }
 0x672   : > { %p3531_p7 = pnand %p3530_p4, %p3683_p5 }
 0x673   : > { %p3536_p11 = por %p3535_p10, %p3534_p9 }
 0x674   : > { %p3532_p8 = pneg %p3531_p7 }
 0x675   : > { %p3538_p13 = por %p3537_p12, %p3536_p11 }
 0x677   : > { %p3539_p0 = pnand %p3538_p13, %p3532_p8 }
 0x679   : > { %3542 = shalt.err (!%p3539_p0)
}
 0x67a   : > { %3441 = dma.vmem_to_hbm [thread:$0]  (%p3683_p5), %s4111_s19, 256, %s4109_s28, %s3219_s25  }
 0x67b PF: > { %p3447_p1 = scmp.ge.s32.totalorder %s3577_s24, 2  ;;  %s3245_s18 = sand.u32 1, %s3565_s21  }
 0x67c   : > { %s3246_s20 = scalar_lea.sflag [#allocation3], %s3245_s18 }
 0x67d   : > { %p3444_p2 = pnand %p3447_p1, %p3687_p6 }
 0x67f   : > { %3560 = dma.done.wait (!%p3444_p2), %s3246_s20, 256  }
 0x680   : > { %3562 = vsyncadd (!%p3444_p2), %s3246_s20, 4294967040  ;;  %p16_p3 = scmp.ge.s32.totalorder %s3670_s27, 4   ;;  %s4160_s21 = smov %s3569_s22 }
 0x681   : > { %s4161_s22 = smov %s3573_s23  ;;  %s4162_s23 = smov %s3681_s30 }
 0x682   : > { %s4163_s24 = smov %s3670_s27  ;;  %18 = sbr.rel (!%p16_p3) target bundleno = 3 (0x3), region = 130 }
 0x689   :  { %3251 = vsyncpa [#allocation3], 1 }
 0x68a   :  { %3253 = vsyncpa [#allocation3 + $0x1], 1 }

</bundles_post_ra>
